<compile_context>
chip_gen: v7x
topology: tpu7x:2x2x1
jax: 0.10.0
libtpu: 0.0.40
codegen_flags: <defaults>
</compile_context>

<pallas_src>
import math

import jax
import jax.numpy as jnp
import numpy as np
from jax.experimental import pallas as pl
from jax.experimental.pallas import tpu as pltpu

# ---------------- model hyper-parameters (small, consistent with the module) ----
INPUT_DIM = 16
HIDDEN_DIM = 32
NUM_EXPERTS = 3
NUM_HEADS = 4
NUM_LAYERS = 2
TEMPERATURE = 1.0
HEAD_DIM = HIDDEN_DIM // NUM_HEADS
FFN_DIM = HIDDEN_DIM * 4
LN_EPS = 1e-5

BATCH = 2
SEQ = 8
BS = BATCH * SEQ

# --- packed-parameter layout constants -------------------------------------------
# wA:   (L, H, 384)  lanes [0:96)=Wqkv(Wq pre-scaled)  [128:160)=Wo  [256:384)=W1
WA_QKV = 0
WA_WO = 128
WA_W1 = 256
WA_LANES = 384
# vecs: (L, 8, 128)  one parameter vector per sublane row, every slice lane-0 aligned
ROW_BQKV = 0      # [bq*scale | bk | bv] in lanes 0:96
ROW_BO = 1
ROW_B1 = 2        # full 128 lanes
ROW_B2 = 3
ROW_LN1W = 4
ROW_LN1B = 5
ROW_LN2W = 6
ROW_LN2B = 7
VEC_ROWS = 8
# wio:  (2, H, H)  slot0 rows[0:D)=W_in, row D=b_in, row D+1 lanes[0:E)=b_out
#                  slot1 = W_out padded to (H, H) in lanes [0:E)


# ------------------------------- Pallas kernel ----------------------------------
def gating_kernel(x_ref, wio_ref, wA_ref, w2_ref, vec_ref, out_ref):
    f32 = jnp.float32
    H, F, D, E = HIDDEN_DIM, FFN_DIM, INPUT_DIM, NUM_EXPERTS
    NH, HD, B, S = NUM_HEADS, HEAD_DIM, BATCH, SEQ

    def layer_norm(v, w, b):
        mu = jnp.mean(v, axis=-1, keepdims=True)
        var = jnp.mean((v - mu) ** 2, axis=-1, keepdims=True)
        return (v - mu) * jax.lax.rsqrt(var + LN_EPS) * w + b

    x = x_ref[...].astype(f32)                                    # (BS, Din)
    wio = wio_ref[...]                                            # (2, H, H)
    w_in = wio[0, :D, :]                                          # (Din, H)
    b_in = wio[0, D, :]                                           # (H,)
    b_out = wio[0, D + 1, :E]                                     # (E,)
    w_out = wio[1, :, :E]                                         # (H, E)

    # Input projection: one 2-D MXU matmul over the flattened (B*S) row axis.
    h = jnp.dot(x, w_in, preferred_element_type=f32) + b_in       # (BS, H)

    for l in range(NUM_LAYERS):
        wA = wA_ref[l]                                            # (H, 384)
        wqkv = wA[:, WA_QKV:WA_QKV + 3 * H]                       # (H, 3H)
        wo = wA[:, WA_WO:WA_WO + H]                               # (H, H)
        w1 = wA[:, WA_W1:WA_W1 + F]                               # (H, F)
        w2 = w2_ref[l]                                            # (F, H)
        vec = vec_ref[l]                                          # (8, 128)

        # ---- multi-head self-attention (post-norm, dropout = identity) ----
        # Fused Q/K/V projection; Wq/bq carry the 1/sqrt(HEAD_DIM) scale already.
        qkv = (jnp.dot(h, wqkv, preferred_element_type=f32)
               + vec[ROW_BQKV, :3 * H])                           # (BS, 3H)

        # Gather all heads into one combined (NH*B, S, HD) batch axis so the
        # whole attention is two batched contractions + one softmax block.
        qs = jnp.concatenate(
            [qkv[:, hh * HD:(hh + 1) * HD].reshape(B, S, HD) for hh in range(NH)],
            axis=0)                                               # (NH*B, S, HD)
        ks = jnp.concatenate(
            [qkv[:, H + hh * HD:H + (hh + 1) * HD].reshape(B, S, HD)
             for hh in range(NH)], axis=0)
        vs = jnp.concatenate(
            [qkv[:, 2 * H + hh * HD:2 * H + (hh + 1) * HD].reshape(B, S, HD)
             for hh in range(NH)], axis=0)

        s = jnp.einsum('bqd,bkd->bqk', qs, ks,
                       preferred_element_type=f32)                # (NH*B, S, S)
        s = s - jnp.max(s, axis=-1, keepdims=True)
        p = jnp.exp(s)
        p = p * pl.reciprocal(jnp.sum(p, axis=-1, keepdims=True), approx=True)
        ctx = jnp.einsum('bqk,bkd->bqd', p, vs,
                         preferred_element_type=f32)              # (NH*B, S, HD)

        # Reassemble heads on the lane axis in registers (no VMEM scratch).
        attn_ctx = jnp.concatenate(
            [ctx[hh * B:(hh + 1) * B].reshape(BS, HD) for hh in range(NH)],
            axis=-1)                                              # (BS, H)

        attn = (jnp.dot(attn_ctx, wo, preferred_element_type=f32)
                + vec[ROW_BO, :H])                                # (BS, H)
        h = layer_norm(h + attn, vec[ROW_LN1W, :H], vec[ROW_LN1B, :H])

        # ---- feed-forward (relu), dropout = identity ----
        f = jnp.dot(h, w1, preferred_element_type=f32) + vec[ROW_B1, :F]
        f = jnp.maximum(f, 0.0)
        f = jnp.dot(f, w2, preferred_element_type=f32) + vec[ROW_B2, :H]
        h = layer_norm(h + f, vec[ROW_LN2W, :H], vec[ROW_LN2B, :H])

    # ---- mean pool over seq + output head + softmax(T) ----
    pooled = jnp.mean(h.reshape(B, S, H), axis=1)                 # (B, H)
    logits = jnp.dot(pooled, w_out, preferred_element_type=f32) + b_out
    if TEMPERATURE != 1.0:
        logits = logits * (1.0 / TEMPERATURE)
    logits = logits - jnp.max(logits, axis=-1, keepdims=True)
    e = jnp.exp(logits)
    # Exact divide: gating probabilities must sum to 1 (tiny (B, E) tensor).
    out_ref[...] = (e / jnp.sum(e, axis=-1, keepdims=True)).astype(out_ref.dtype)


# ------------------------------- param packing ------------------------------------
def pack_params(p):
    """Pack the 21 natural parameter tensors into 4 arrays (fewer, larger DMAs)."""
    L, H, F, E, D = NUM_LAYERS, HIDDEN_DIM, FFN_DIM, NUM_EXPERTS, INPUT_DIM
    f32 = jnp.float32
    scale = 1.0 / math.sqrt(HEAD_DIM)

    # wio: (2, H, H) — slot 0 = [W_in rows | b_in row | b_out row], slot 1 = W_out.
    wio0 = jnp.zeros((H, H), f32)
    wio0 = wio0.at[:D, :].set(p['w_in'])
    wio0 = wio0.at[D, :].set(p['b_in'][0])
    wio0 = wio0.at[D + 1, :E].set(p['bout'][0])
    wio1 = jnp.zeros((H, H), f32).at[:, :E].set(p['wout'])
    wio = jnp.stack([wio0, wio1], axis=0)

    # wA: (L, H, 384) with 128-lane-aligned chunks [Wqkv | Wo | W1]; Wq pre-scaled.
    wqkv = jnp.concatenate([p['wq'] * scale, p['wk'], p['wv']], axis=-1)  # (L,H,3H)
    wA = jnp.zeros((L, H, WA_LANES), f32)
    wA = wA.at[:, :, WA_QKV:WA_QKV + 3 * H].set(wqkv)
    wA = wA.at[:, :, WA_WO:WA_WO + H].set(p['wo'])
    wA = wA.at[:, :, WA_W1:WA_W1 + F].set(p['w1'])

    # vecs: (L, 8, 128) — one bias / LayerNorm vector per sublane row (lane-0 aligned).
    vecs = jnp.zeros((L, VEC_ROWS, 128), f32)
    vecs = vecs.at[:, ROW_BQKV, 0:H].set(p['bq'] * scale)
    vecs = vecs.at[:, ROW_BQKV, H:2 * H].set(p['bk'])
    vecs = vecs.at[:, ROW_BQKV, 2 * H:3 * H].set(p['bv'])
    vecs = vecs.at[:, ROW_BO, :H].set(p['bo'])
    vecs = vecs.at[:, ROW_B1, :F].set(p['b1'])
    vecs = vecs.at[:, ROW_B2, :H].set(p['b2'])
    vecs = vecs.at[:, ROW_LN1W, :H].set(p['ln1w'])
    vecs = vecs.at[:, ROW_LN1B, :H].set(p['ln1b'])
    vecs = vecs.at[:, ROW_LN2W, :H].set(p['ln2w'])
    vecs = vecs.at[:, ROW_LN2B, :H].set(p['ln2b'])

    return {'wio': wio, 'wA': wA, 'w2': p['w2'], 'vecs': vecs}


# ------------------------------- wrapper -----------------------------------------
@jax.jit
def transformer_gating_forward(x, packed):
    B, S, _ = x.shape
    x2d = x.reshape(B * S, INPUT_DIM)        # flatten (B,S) -> one MXU row axis
    vmem = pl.BlockSpec(memory_space=pltpu.MemorySpace.VMEM)
    args = (x2d, packed['wio'], packed['wA'], packed['w2'], packed['vecs'])
    return pl.pallas_call(
        gating_kernel,
        out_shape=jax.ShapeDtypeStruct((B, NUM_EXPERTS), jnp.float32),
        in_specs=[vmem] * len(args),
        out_specs=vmem,
    )(*args)


# ------------------------------- parameter init ----------------------------------
def init_params(key):
    ks = jax.random.split(key, 24)

    def rnd(k, shape, fan_in):
        return jax.random.normal(k, shape, jnp.float32) / math.sqrt(fan_in)

    L, H, F, E, D = NUM_LAYERS, HIDDEN_DIM, FFN_DIM, NUM_EXPERTS, INPUT_DIM
    params = {
        'w_in':  rnd(ks[0], (D, H), D),
        'b_in':  0.01 * jax.random.normal(ks[1], (1, H), jnp.float32),
        'wq':    rnd(ks[2], (L, H, H), H),
        'wk':    rnd(ks[3], (L, H, H), H),
        'wv':    rnd(ks[4], (L, H, H), H),
        'bq':    0.01 * jax.random.normal(ks[5], (L, H), jnp.float32),
        'bk':    0.01 * jax.random.normal(ks[6], (L, H), jnp.float32),
        'bv':    0.01 * jax.random.normal(ks[7], (L, H), jnp.float32),
        'wo':    rnd(ks[8], (L, H, H), H),
        'bo':    0.01 * jax.random.normal(ks[9], (L, H), jnp.float32),
        'w1':    rnd(ks[10], (L, H, F), H),
        'b1':    0.01 * jax.random.normal(ks[11], (L, F), jnp.float32),
        'w2':    rnd(ks[12], (L, F, H), F),
        'b2':    0.01 * jax.random.normal(ks[13], (L, H), jnp.float32),
        'ln1w':  1.0 + 0.01 * jax.random.normal(ks[14], (L, H), jnp.float32),
        'ln1b':  0.01 * jax.random.normal(ks[15], (L, H), jnp.float32),
        'ln2w':  1.0 + 0.01 * jax.random.normal(ks[16], (L, H), jnp.float32),
        'ln2b':  0.01 * jax.random.normal(ks[17], (L, H), jnp.float32),
        'wout':  rnd(ks[18], (H, E), H),
        'bout':  0.01 * jax.random.normal(ks[19], (1, E), jnp.float32),
    }
    return params


# ------------------------------- pure-JAX reference -------------------------------
def ref_forward(x, p):
    def layer_norm(v, w, b):
        mu = jnp.mean(v, axis=-1, keepdims=True)
        var = jnp.mean((v - mu) ** 2, axis=-1, keepdims=True)
        return (v - mu) * jax.lax.rsqrt(var + LN_EPS) * w + b

    h = jnp.einsum('bsd,dh->bsh', x, p['w_in']) + p['b_in'][0]
    scale = 1.0 / math.sqrt(HEAD_DIM)
    for l in range(NUM_LAYERS):
        q = jnp.einsum('bsh,hk->bsk', h, p['wq'][l]) + p['bq'][l]
        k = jnp.einsum('bsh,hk->bsk', h, p['wk'][l]) + p['bk'][l]
        v = jnp.einsum('bsh,hk->bsk', h, p['wv'][l]) + p['bv'][l]
        B, S, _ = q.shape
        q4 = q.reshape(B, S, NUM_HEADS, HEAD_DIM)
        k4 = k.reshape(B, S, NUM_HEADS, HEAD_DIM)
        v4 = v.reshape(B, S, NUM_HEADS, HEAD_DIM)
        s = jnp.einsum('bqnd,bknd->bnqk', q4, k4) * scale
        pm = jax.nn.softmax(s, axis=-1)
        o = jnp.einsum('bnqk,bknd->bqnd', pm, v4).reshape(B, S, HIDDEN_DIM)
        attn = jnp.einsum('bsh,hk->bsk', o, p['wo'][l]) + p['bo'][l]
        h = layer_norm(h + attn, p['ln1w'][l], p['ln1b'][l])
        f = jax.nn.relu(jnp.einsum('bsh,hf->bsf', h, p['w1'][l]) + p['b1'][l])
        f = jnp.einsum('bsf,fh->bsh', f, p['w2'][l]) + p['b2'][l]
        h = layer_norm(h + f, p['ln2w'][l], p['ln2b'][l])
    pooled = jnp.mean(h, axis=1)
    logits = (pooled @ p['wout'] + p['bout'][0]) / TEMPERATURE
    return jax.nn.softmax(logits, axis=-1)


# ------------------------------------ main ----------------------------------------
if __name__ == "__main__":
    key = jax.random.PRNGKey(0)
    k_x, k_p = jax.random.split(key)

    x = jax.random.normal(k_x, (BATCH, SEQ, INPUT_DIM), jnp.float32)
    params = init_params(k_p)
    packed = pack_params(params)

    out = transformer_gating_forward(x, packed)
    out = jax.block_until_ready(out)

    # sanity checks against a pure-JAX reference of the same math
    # (slightly relaxed tolerance: approx-reciprocal denominators in attention)
    ref = jax.block_until_ready(ref_forward(x, params))
    np.testing.assert_allclose(np.asarray(out), np.asarray(ref), rtol=2e-3, atol=1e-3)
    # exact divide in the final softmax -> rows sum to 1 to float rounding
    np.testing.assert_allclose(np.asarray(out).sum(axis=-1), np.ones(BATCH), atol=1e-5)

    print("KERNEL_OK")
</pallas_src>

<mosaic_0001>
module attributes {stable_mosaic.version = 11 : i64} {
  func.func @gating_kernel(%arg0: memref<16x16xf32, #tpu.memory_space<vmem>>, %arg1: memref<2x32x32xf32, #tpu.memory_space<vmem>>, %arg2: memref<2x32x384xf32, #tpu.memory_space<vmem>>, %arg3: memref<2x128x32xf32, #tpu.memory_space<vmem>>, %arg4: memref<2x8x128xf32, #tpu.memory_space<vmem>>, %arg5: memref<2x3xf32, #tpu.memory_space<vmem>>) attributes {dimension_semantics = [], scalar_prefetch = 0 : i64, scratch_operands = 0 : i64, tpu.core_type = #tpu.core_type<tc>} {
    %c0 = arith.constant 0 : index
    %c0_0 = arith.constant 0 : index
    %0 = vector.load %arg0[%c0, %c0_0] : memref<16x16xf32, #tpu.memory_space<vmem>>, vector<16x16xf32>
    %c0_1 = arith.constant 0 : index
    %c0_2 = arith.constant 0 : index
    %c0_3 = arith.constant 0 : index
    %1 = vector.load %arg1[%c0_1, %c0_2, %c0_3] : memref<2x32x32xf32, #tpu.memory_space<vmem>>, vector<2x32x32xf32>
    %2 = vector.extract_strided_slice %1 {offsets = [0, 0, 0], sizes = [1, 16, 32], strides = [1, 1, 1]} : vector<2x32x32xf32> to vector<1x16x32xf32>
    %3 = vector.shape_cast %2 : vector<1x16x32xf32> to vector<16x32xf32>
    %4 = vector.extract_strided_slice %1 {offsets = [0, 16, 0], sizes = [1, 1, 32], strides = [1, 1, 1]} : vector<2x32x32xf32> to vector<1x1x32xf32>
    %5 = vector.shape_cast %4 : vector<1x1x32xf32> to vector<32xf32>
    %6 = vector.extract_strided_slice %1 {offsets = [0, 17, 0], sizes = [1, 1, 3], strides = [1, 1, 1]} : vector<2x32x32xf32> to vector<1x1x3xf32>
    %7 = vector.shape_cast %6 : vector<1x1x3xf32> to vector<3xf32>
    %8 = vector.extract_strided_slice %1 {offsets = [1, 0, 0], sizes = [1, 32, 3], strides = [1, 1, 1]} : vector<2x32x32xf32> to vector<1x32x3xf32>
    %9 = vector.shape_cast %8 : vector<1x32x3xf32> to vector<32x3xf32>
    %cst = arith.constant dense<0.000000e+00> : vector<16x32xf32>
    %10 = tpu.matmul %0, %3, %cst {dimension_numbers = #tpu.dot_dimension_numbers<[1], [0], [0], [1], [0, 0, 1, 1], [], []>} : vector<16x16xf32>, vector<16x32xf32>, vector<16x32xf32> -> vector<16x32xf32>
    %11 = vector.shape_cast %5 : vector<32xf32> to vector<1x32xf32>
    %12 = vector.broadcast %11 : vector<1x32xf32> to vector<16x32xf32>
    %13 = arith.addf %10, %12 : vector<16x32xf32>
    %c0_4 = arith.constant 0 : index
    %c0_5 = arith.constant 0 : index
    %c0_6 = arith.constant 0 : index
    %14 = vector.load %arg2[%c0_4, %c0_5, %c0_6] : memref<2x32x384xf32, #tpu.memory_space<vmem>>, vector<1x32x384xf32>
    %15 = vector.shape_cast %14 : vector<1x32x384xf32> to vector<32x384xf32>
    %16 = vector.extract_strided_slice %15 {offsets = [0, 0], sizes = [32, 96], strides = [1, 1]} : vector<32x384xf32> to vector<32x96xf32>
    %17 = vector.extract_strided_slice %15 {offsets = [0, 128], sizes = [32, 32], strides = [1, 1]} : vector<32x384xf32> to vector<32x32xf32>
    %18 = vector.extract_strided_slice %15 {offsets = [0, 256], sizes = [32, 128], strides = [1, 1]} : vector<32x384xf32> to vector<32x128xf32>
    %c0_7 = arith.constant 0 : index
    %c0_8 = arith.constant 0 : index
    %c0_9 = arith.constant 0 : index
    %19 = vector.load %arg3[%c0_7, %c0_8, %c0_9] : memref<2x128x32xf32, #tpu.memory_space<vmem>>, vector<1x128x32xf32>
    %20 = vector.shape_cast %19 : vector<1x128x32xf32> to vector<128x32xf32>
    %c0_10 = arith.constant 0 : index
    %c0_11 = arith.constant 0 : index
    %c0_12 = arith.constant 0 : index
    %21 = vector.load %arg4[%c0_10, %c0_11, %c0_12] : memref<2x8x128xf32, #tpu.memory_space<vmem>>, vector<1x8x128xf32>
    %22 = vector.shape_cast %21 : vector<1x8x128xf32> to vector<8x128xf32>
    %cst_13 = arith.constant dense<0.000000e+00> : vector<16x96xf32>
    %23 = tpu.matmul %13, %16, %cst_13 {dimension_numbers = #tpu.dot_dimension_numbers<[1], [0], [0], [1], [0, 0, 1, 1], [], []>} : vector<16x32xf32>, vector<32x96xf32>, vector<16x96xf32> -> vector<16x96xf32>
    %24 = vector.extract_strided_slice %22 {offsets = [0, 0], sizes = [1, 96], strides = [1, 1]} : vector<8x128xf32> to vector<1x96xf32>
    %25 = vector.shape_cast %24 : vector<1x96xf32> to vector<96xf32>
    %26 = vector.shape_cast %25 : vector<96xf32> to vector<1x96xf32>
    %27 = vector.broadcast %26 : vector<1x96xf32> to vector<16x96xf32>
    %28 = arith.addf %23, %27 : vector<16x96xf32>
    %29 = vector.extract_strided_slice %28 {offsets = [0, 0], sizes = [16, 8], strides = [1, 1]} : vector<16x96xf32> to vector<16x8xf32>
    %30 = vector.shape_cast %29 : vector<16x8xf32> to vector<2x8x8xf32>
    %31 = vector.extract_strided_slice %28 {offsets = [0, 8], sizes = [16, 8], strides = [1, 1]} : vector<16x96xf32> to vector<16x8xf32>
    %32 = vector.shape_cast %31 : vector<16x8xf32> to vector<2x8x8xf32>
    %33 = vector.extract_strided_slice %28 {offsets = [0, 16], sizes = [16, 8], strides = [1, 1]} : vector<16x96xf32> to vector<16x8xf32>
    %34 = vector.shape_cast %33 : vector<16x8xf32> to vector<2x8x8xf32>
    %35 = vector.extract_strided_slice %28 {offsets = [0, 24], sizes = [16, 8], strides = [1, 1]} : vector<16x96xf32> to vector<16x8xf32>
    %36 = vector.shape_cast %35 : vector<16x8xf32> to vector<2x8x8xf32>
    %37 = tpu.concatenate %30, %32, %34, %36 in 0 : vector<2x8x8xf32>, vector<2x8x8xf32>, vector<2x8x8xf32>, vector<2x8x8xf32> -> vector<8x8x8xf32>
    %38 = vector.extract_strided_slice %28 {offsets = [0, 32], sizes = [16, 8], strides = [1, 1]} : vector<16x96xf32> to vector<16x8xf32>
    %39 = vector.shape_cast %38 : vector<16x8xf32> to vector<2x8x8xf32>
    %40 = vector.extract_strided_slice %28 {offsets = [0, 40], sizes = [16, 8], strides = [1, 1]} : vector<16x96xf32> to vector<16x8xf32>
    %41 = vector.shape_cast %40 : vector<16x8xf32> to vector<2x8x8xf32>
    %42 = vector.extract_strided_slice %28 {offsets = [0, 48], sizes = [16, 8], strides = [1, 1]} : vector<16x96xf32> to vector<16x8xf32>
    %43 = vector.shape_cast %42 : vector<16x8xf32> to vector<2x8x8xf32>
    %44 = vector.extract_strided_slice %28 {offsets = [0, 56], sizes = [16, 8], strides = [1, 1]} : vector<16x96xf32> to vector<16x8xf32>
    %45 = vector.shape_cast %44 : vector<16x8xf32> to vector<2x8x8xf32>
    %46 = tpu.concatenate %39, %41, %43, %45 in 0 : vector<2x8x8xf32>, vector<2x8x8xf32>, vector<2x8x8xf32>, vector<2x8x8xf32> -> vector<8x8x8xf32>
    %47 = vector.extract_strided_slice %28 {offsets = [0, 64], sizes = [16, 8], strides = [1, 1]} : vector<16x96xf32> to vector<16x8xf32>
    %48 = vector.shape_cast %47 : vector<16x8xf32> to vector<2x8x8xf32>
    %49 = vector.extract_strided_slice %28 {offsets = [0, 72], sizes = [16, 8], strides = [1, 1]} : vector<16x96xf32> to vector<16x8xf32>
    %50 = vector.shape_cast %49 : vector<16x8xf32> to vector<2x8x8xf32>
    %51 = vector.extract_strided_slice %28 {offsets = [0, 80], sizes = [16, 8], strides = [1, 1]} : vector<16x96xf32> to vector<16x8xf32>
    %52 = vector.shape_cast %51 : vector<16x8xf32> to vector<2x8x8xf32>
    %53 = vector.extract_strided_slice %28 {offsets = [0, 88], sizes = [16, 8], strides = [1, 1]} : vector<16x96xf32> to vector<16x8xf32>
    %54 = vector.shape_cast %53 : vector<16x8xf32> to vector<2x8x8xf32>
    %55 = tpu.concatenate %48, %50, %52, %54 in 0 : vector<2x8x8xf32>, vector<2x8x8xf32>, vector<2x8x8xf32>, vector<2x8x8xf32> -> vector<8x8x8xf32>
    "tpu.trace_start"() <{level = 10 : i32, message = "bqd,bkd->bqk"}> : () -> ()
    %cst_14 = arith.constant dense<0.000000e+00> : vector<8x8x8xf32>
    %56 = tpu.matmul %37, %46, %cst_14 {dimension_numbers = #tpu.dot_dimension_numbers<[2], [2], [1], [1], [0, 0, 0, 1, 1, 1], [0], [0]>} : vector<8x8x8xf32>, vector<8x8x8xf32>, vector<8x8x8xf32> -> vector<8x8x8xf32>
    "tpu.trace_stop"() : () -> ()
    %cst_15 = arith.constant dense<0xFF800000> : vector<8x8xf32>
    %57 = vector.multi_reduction <maximumf>, %56, %cst_15 [2] : vector<8x8x8xf32> to vector<8x8xf32>
    %58 = vector.shape_cast %57 : vector<8x8xf32> to vector<8x8x1xf32>
    %59 = vector.broadcast %58 : vector<8x8x1xf32> to vector<8x8x8xf32>
    %60 = arith.subf %56, %59 : vector<8x8x8xf32>
    %61 = math.exp %60 : vector<8x8x8xf32>
    %cst_16 = arith.constant dense<0.000000e+00> : vector<8x8xf32>
    %62 = vector.multi_reduction <add>, %61, %cst_16 [2] : vector<8x8x8xf32> to vector<8x8xf32>
    %63 = vector.shape_cast %62 : vector<8x8xf32> to vector<8x8x1xf32>
    %64 = tpu.reciprocal %63 {approx = true} : vector<8x8x1xf32> -> vector<8x8x1xf32>
    %65 = vector.broadcast %64 : vector<8x8x1xf32> to vector<8x8x8xf32>
    %66 = arith.mulf %61, %65 : vector<8x8x8xf32>
    "tpu.trace_start"() <{level = 10 : i32, message = "bqk,bkd->bqd"}> : () -> ()
    %cst_17 = arith.constant dense<0.000000e+00> : vector<8x8x8xf32>
    %67 = tpu.matmul %66, %55, %cst_17 {dimension_numbers = #tpu.dot_dimension_numbers<[2], [1], [1], [2], [0, 0, 0, 1, 1, 2], [0], [0]>} : vector<8x8x8xf32>, vector<8x8x8xf32>, vector<8x8x8xf32> -> vector<8x8x8xf32>
    "tpu.trace_stop"() : () -> ()
    %68 = vector.extract_strided_slice %67 {offsets = [0, 0, 0], sizes = [2, 8, 8], strides = [1, 1, 1]} : vector<8x8x8xf32> to vector<2x8x8xf32>
    %69 = vector.shape_cast %68 : vector<2x8x8xf32> to vector<16x8xf32>
    %70 = vector.extract_strided_slice %67 {offsets = [2, 0, 0], sizes = [2, 8, 8], strides = [1, 1, 1]} : vector<8x8x8xf32> to vector<2x8x8xf32>
    %71 = vector.shape_cast %70 : vector<2x8x8xf32> to vector<16x8xf32>
    %72 = vector.extract_strided_slice %67 {offsets = [4, 0, 0], sizes = [2, 8, 8], strides = [1, 1, 1]} : vector<8x8x8xf32> to vector<2x8x8xf32>
    %73 = vector.shape_cast %72 : vector<2x8x8xf32> to vector<16x8xf32>
    %74 = vector.extract_strided_slice %67 {offsets = [6, 0, 0], sizes = [2, 8, 8], strides = [1, 1, 1]} : vector<8x8x8xf32> to vector<2x8x8xf32>
    %75 = vector.shape_cast %74 : vector<2x8x8xf32> to vector<16x8xf32>
    %76 = tpu.concatenate %69, %71, %73, %75 in 1 : vector<16x8xf32>, vector<16x8xf32>, vector<16x8xf32>, vector<16x8xf32> -> vector<16x32xf32>
    %cst_18 = arith.constant dense<0.000000e+00> : vector<16x32xf32>
    %77 = tpu.matmul %76, %17, %cst_18 {dimension_numbers = #tpu.dot_dimension_numbers<[1], [0], [0], [1], [0, 0, 1, 1], [], []>} : vector<16x32xf32>, vector<32x32xf32>, vector<16x32xf32> -> vector<16x32xf32>
    %78 = vector.extract_strided_slice %22 {offsets = [1, 0], sizes = [1, 32], strides = [1, 1]} : vector<8x128xf32> to vector<1x32xf32>
    %79 = vector.shape_cast %78 : vector<1x32xf32> to vector<32xf32>
    %80 = vector.shape_cast %79 : vector<32xf32> to vector<1x32xf32>
    %81 = vector.broadcast %80 : vector<1x32xf32> to vector<16x32xf32>
    %82 = arith.addf %77, %81 : vector<16x32xf32>
    %83 = arith.addf %13, %82 : vector<16x32xf32>
    %84 = vector.extract_strided_slice %22 {offsets = [4, 0], sizes = [1, 32], strides = [1, 1]} : vector<8x128xf32> to vector<1x32xf32>
    %85 = vector.shape_cast %84 : vector<1x32xf32> to vector<32xf32>
    %86 = vector.extract_strided_slice %22 {offsets = [5, 0], sizes = [1, 32], strides = [1, 1]} : vector<8x128xf32> to vector<1x32xf32>
    %87 = vector.shape_cast %86 : vector<1x32xf32> to vector<32xf32>
    %cst_19 = arith.constant dense<0.000000e+00> : vector<16xf32>
    %88 = vector.multi_reduction <add>, %83, %cst_19 [1] : vector<16x32xf32> to vector<16xf32>
    %89 = vector.shape_cast %88 : vector<16xf32> to vector<16x1xf32>
    %cst_20 = arith.constant 3.200000e+01 : f32
    %90 = vector.broadcast %cst_20 : f32 to vector<16x1xf32>
    %91 = arith.divf %89, %90 : vector<16x1xf32>
    %92 = vector.broadcast %91 : vector<16x1xf32> to vector<16x32xf32>
    %93 = arith.subf %83, %92 : vector<16x32xf32>
    %94 = arith.mulf %93, %93 : vector<16x32xf32>
    %cst_21 = arith.constant dense<0.000000e+00> : vector<16xf32>
    %95 = vector.multi_reduction <add>, %94, %cst_21 [1] : vector<16x32xf32> to vector<16xf32>
    %96 = vector.shape_cast %95 : vector<16xf32> to vector<16x1xf32>
    %cst_22 = arith.constant 3.200000e+01 : f32
    %97 = vector.broadcast %cst_22 : f32 to vector<16x1xf32>
    %98 = arith.divf %96, %97 : vector<16x1xf32>
    %99 = vector.broadcast %91 : vector<16x1xf32> to vector<16x32xf32>
    %100 = arith.subf %83, %99 : vector<16x32xf32>
    %cst_23 = arith.constant 9.99999974E-6 : f32
    %101 = vector.broadcast %cst_23 : f32 to vector<16x1xf32>
    %102 = arith.addf %98, %101 : vector<16x1xf32>
    %103 = math.rsqrt %102 : vector<16x1xf32>
    %104 = vector.broadcast %103 : vector<16x1xf32> to vector<16x32xf32>
    %105 = arith.mulf %100, %104 : vector<16x32xf32>
    %106 = vector.shape_cast %85 : vector<32xf32> to vector<1x32xf32>
    %107 = vector.broadcast %106 : vector<1x32xf32> to vector<16x32xf32>
    %108 = arith.mulf %105, %107 : vector<16x32xf32>
    %109 = vector.shape_cast %87 : vector<32xf32> to vector<1x32xf32>
    %110 = vector.broadcast %109 : vector<1x32xf32> to vector<16x32xf32>
    %111 = arith.addf %108, %110 : vector<16x32xf32>
    %cst_24 = arith.constant dense<0.000000e+00> : vector<16x128xf32>
    %112 = tpu.matmul %111, %18, %cst_24 {dimension_numbers = #tpu.dot_dimension_numbers<[1], [0], [0], [1], [0, 0, 1, 1], [], []>} : vector<16x32xf32>, vector<32x128xf32>, vector<16x128xf32> -> vector<16x128xf32>
    %113 = vector.extract_strided_slice %22 {offsets = [2, 0], sizes = [1, 128], strides = [1, 1]} : vector<8x128xf32> to vector<1x128xf32>
    %114 = vector.shape_cast %113 : vector<1x128xf32> to vector<128xf32>
    %115 = vector.shape_cast %114 : vector<128xf32> to vector<1x128xf32>
    %116 = vector.broadcast %115 : vector<1x128xf32> to vector<16x128xf32>
    %117 = arith.addf %112, %116 : vector<16x128xf32>
    %cst_25 = arith.constant 0.000000e+00 : f32
    %118 = vector.broadcast %cst_25 : f32 to vector<16x128xf32>
    %119 = arith.maximumf %117, %118 : vector<16x128xf32>
    %cst_26 = arith.constant dense<0.000000e+00> : vector<16x32xf32>
    %120 = tpu.matmul %119, %20, %cst_26 {dimension_numbers = #tpu.dot_dimension_numbers<[1], [0], [0], [1], [0, 0, 1, 1], [], []>} : vector<16x128xf32>, vector<128x32xf32>, vector<16x32xf32> -> vector<16x32xf32>
    %121 = vector.extract_strided_slice %22 {offsets = [3, 0], sizes = [1, 32], strides = [1, 1]} : vector<8x128xf32> to vector<1x32xf32>
    %122 = vector.shape_cast %121 : vector<1x32xf32> to vector<32xf32>
    %123 = vector.shape_cast %122 : vector<32xf32> to vector<1x32xf32>
    %124 = vector.broadcast %123 : vector<1x32xf32> to vector<16x32xf32>
    %125 = arith.addf %120, %124 : vector<16x32xf32>
    %126 = arith.addf %111, %125 : vector<16x32xf32>
    %127 = vector.extract_strided_slice %22 {offsets = [6, 0], sizes = [1, 32], strides = [1, 1]} : vector<8x128xf32> to vector<1x32xf32>
    %128 = vector.shape_cast %127 : vector<1x32xf32> to vector<32xf32>
    %129 = vector.extract_strided_slice %22 {offsets = [7, 0], sizes = [1, 32], strides = [1, 1]} : vector<8x128xf32> to vector<1x32xf32>
    %130 = vector.shape_cast %129 : vector<1x32xf32> to vector<32xf32>
    %cst_27 = arith.constant dense<0.000000e+00> : vector<16xf32>
    %131 = vector.multi_reduction <add>, %126, %cst_27 [1] : vector<16x32xf32> to vector<16xf32>
    %132 = vector.shape_cast %131 : vector<16xf32> to vector<16x1xf32>
    %cst_28 = arith.constant 3.200000e+01 : f32
    %133 = vector.broadcast %cst_28 : f32 to vector<16x1xf32>
    %134 = arith.divf %132, %133 : vector<16x1xf32>
    %135 = vector.broadcast %134 : vector<16x1xf32> to vector<16x32xf32>
    %136 = arith.subf %126, %135 : vector<16x32xf32>
    %137 = arith.mulf %136, %136 : vector<16x32xf32>
    %cst_29 = arith.constant dense<0.000000e+00> : vector<16xf32>
    %138 = vector.multi_reduction <add>, %137, %cst_29 [1] : vector<16x32xf32> to vector<16xf32>
    %139 = vector.shape_cast %138 : vector<16xf32> to vector<16x1xf32>
    %cst_30 = arith.constant 3.200000e+01 : f32
    %140 = vector.broadcast %cst_30 : f32 to vector<16x1xf32>
    %141 = arith.divf %139, %140 : vector<16x1xf32>
    %142 = vector.broadcast %134 : vector<16x1xf32> to vector<16x32xf32>
    %143 = arith.subf %126, %142 : vector<16x32xf32>
    %cst_31 = arith.constant 9.99999974E-6 : f32
    %144 = vector.broadcast %cst_31 : f32 to vector<16x1xf32>
    %145 = arith.addf %141, %144 : vector<16x1xf32>
    %146 = math.rsqrt %145 : vector<16x1xf32>
    %147 = vector.broadcast %146 : vector<16x1xf32> to vector<16x32xf32>
    %148 = arith.mulf %143, %147 : vector<16x32xf32>
    %149 = vector.shape_cast %128 : vector<32xf32> to vector<1x32xf32>
    %150 = vector.broadcast %149 : vector<1x32xf32> to vector<16x32xf32>
    %151 = arith.mulf %148, %150 : vector<16x32xf32>
    %152 = vector.shape_cast %130 : vector<32xf32> to vector<1x32xf32>
    %153 = vector.broadcast %152 : vector<1x32xf32> to vector<16x32xf32>
    %154 = arith.addf %151, %153 : vector<16x32xf32>
    %c1 = arith.constant 1 : index
    %c0_32 = arith.constant 0 : index
    %c0_33 = arith.constant 0 : index
    %155 = vector.load %arg2[%c1, %c0_32, %c0_33] : memref<2x32x384xf32, #tpu.memory_space<vmem>>, vector<1x32x384xf32>
    %156 = vector.shape_cast %155 : vector<1x32x384xf32> to vector<32x384xf32>
    %157 = vector.extract_strided_slice %156 {offsets = [0, 0], sizes = [32, 96], strides = [1, 1]} : vector<32x384xf32> to vector<32x96xf32>
    %158 = vector.extract_strided_slice %156 {offsets = [0, 128], sizes = [32, 32], strides = [1, 1]} : vector<32x384xf32> to vector<32x32xf32>
    %159 = vector.extract_strided_slice %156 {offsets = [0, 256], sizes = [32, 128], strides = [1, 1]} : vector<32x384xf32> to vector<32x128xf32>
    %c1_34 = arith.constant 1 : index
    %c0_35 = arith.constant 0 : index
    %c0_36 = arith.constant 0 : index
    %160 = vector.load %arg3[%c1_34, %c0_35, %c0_36] : memref<2x128x32xf32, #tpu.memory_space<vmem>>, vector<1x128x32xf32>
    %161 = vector.shape_cast %160 : vector<1x128x32xf32> to vector<128x32xf32>
    %c1_37 = arith.constant 1 : index
    %c0_38 = arith.constant 0 : index
    %c0_39 = arith.constant 0 : index
    %162 = vector.load %arg4[%c1_37, %c0_38, %c0_39] : memref<2x8x128xf32, #tpu.memory_space<vmem>>, vector<1x8x128xf32>
    %163 = vector.shape_cast %162 : vector<1x8x128xf32> to vector<8x128xf32>
    %cst_40 = arith.constant dense<0.000000e+00> : vector<16x96xf32>
    %164 = tpu.matmul %154, %157, %cst_40 {dimension_numbers = #tpu.dot_dimension_numbers<[1], [0], [0], [1], [0, 0, 1, 1], [], []>} : vector<16x32xf32>, vector<32x96xf32>, vector<16x96xf32> -> vector<16x96xf32>
    %165 = vector.extract_strided_slice %163 {offsets = [0, 0], sizes = [1, 96], strides = [1, 1]} : vector<8x128xf32> to vector<1x96xf32>
    %166 = vector.shape_cast %165 : vector<1x96xf32> to vector<96xf32>
    %167 = vector.shape_cast %166 : vector<96xf32> to vector<1x96xf32>
    %168 = vector.broadcast %167 : vector<1x96xf32> to vector<16x96xf32>
    %169 = arith.addf %164, %168 : vector<16x96xf32>
    %170 = vector.extract_strided_slice %169 {offsets = [0, 0], sizes = [16, 8], strides = [1, 1]} : vector<16x96xf32> to vector<16x8xf32>
    %171 = vector.shape_cast %170 : vector<16x8xf32> to vector<2x8x8xf32>
    %172 = vector.extract_strided_slice %169 {offsets = [0, 8], sizes = [16, 8], strides = [1, 1]} : vector<16x96xf32> to vector<16x8xf32>
    %173 = vector.shape_cast %172 : vector<16x8xf32> to vector<2x8x8xf32>
    %174 = vector.extract_strided_slice %169 {offsets = [0, 16], sizes = [16, 8], strides = [1, 1]} : vector<16x96xf32> to vector<16x8xf32>
    %175 = vector.shape_cast %174 : vector<16x8xf32> to vector<2x8x8xf32>
    %176 = vector.extract_strided_slice %169 {offsets = [0, 24], sizes = [16, 8], strides = [1, 1]} : vector<16x96xf32> to vector<16x8xf32>
    %177 = vector.shape_cast %176 : vector<16x8xf32> to vector<2x8x8xf32>
    %178 = tpu.concatenate %171, %173, %175, %177 in 0 : vector<2x8x8xf32>, vector<2x8x8xf32>, vector<2x8x8xf32>, vector<2x8x8xf32> -> vector<8x8x8xf32>
    %179 = vector.extract_strided_slice %169 {offsets = [0, 32], sizes = [16, 8], strides = [1, 1]} : vector<16x96xf32> to vector<16x8xf32>
    %180 = vector.shape_cast %179 : vector<16x8xf32> to vector<2x8x8xf32>
    %181 = vector.extract_strided_slice %169 {offsets = [0, 40], sizes = [16, 8], strides = [1, 1]} : vector<16x96xf32> to vector<16x8xf32>
    %182 = vector.shape_cast %181 : vector<16x8xf32> to vector<2x8x8xf32>
    %183 = vector.extract_strided_slice %169 {offsets = [0, 48], sizes = [16, 8], strides = [1, 1]} : vector<16x96xf32> to vector<16x8xf32>
    %184 = vector.shape_cast %183 : vector<16x8xf32> to vector<2x8x8xf32>
    %185 = vector.extract_strided_slice %169 {offsets = [0, 56], sizes = [16, 8], strides = [1, 1]} : vector<16x96xf32> to vector<16x8xf32>
    %186 = vector.shape_cast %185 : vector<16x8xf32> to vector<2x8x8xf32>
    %187 = tpu.concatenate %180, %182, %184, %186 in 0 : vector<2x8x8xf32>, vector<2x8x8xf32>, vector<2x8x8xf32>, vector<2x8x8xf32> -> vector<8x8x8xf32>
    %188 = vector.extract_strided_slice %169 {offsets = [0, 64], sizes = [16, 8], strides = [1, 1]} : vector<16x96xf32> to vector<16x8xf32>
    %189 = vector.shape_cast %188 : vector<16x8xf32> to vector<2x8x8xf32>
    %190 = vector.extract_strided_slice %169 {offsets = [0, 72], sizes = [16, 8], strides = [1, 1]} : vector<16x96xf32> to vector<16x8xf32>
    %191 = vector.shape_cast %190 : vector<16x8xf32> to vector<2x8x8xf32>
    %192 = vector.extract_strided_slice %169 {offsets = [0, 80], sizes = [16, 8], strides = [1, 1]} : vector<16x96xf32> to vector<16x8xf32>
    %193 = vector.shape_cast %192 : vector<16x8xf32> to vector<2x8x8xf32>
    %194 = vector.extract_strided_slice %169 {offsets = [0, 88], sizes = [16, 8], strides = [1, 1]} : vector<16x96xf32> to vector<16x8xf32>
    %195 = vector.shape_cast %194 : vector<16x8xf32> to vector<2x8x8xf32>
    %196 = tpu.concatenate %189, %191, %193, %195 in 0 : vector<2x8x8xf32>, vector<2x8x8xf32>, vector<2x8x8xf32>, vector<2x8x8xf32> -> vector<8x8x8xf32>
    "tpu.trace_start"() <{level = 10 : i32, message = "bqd,bkd->bqk"}> : () -> ()
    %cst_41 = arith.constant dense<0.000000e+00> : vector<8x8x8xf32>
    %197 = tpu.matmul %178, %187, %cst_41 {dimension_numbers = #tpu.dot_dimension_numbers<[2], [2], [1], [1], [0, 0, 0, 1, 1, 1], [0], [0]>} : vector<8x8x8xf32>, vector<8x8x8xf32>, vector<8x8x8xf32> -> vector<8x8x8xf32>
    "tpu.trace_stop"() : () -> ()
    %cst_42 = arith.constant dense<0xFF800000> : vector<8x8xf32>
    %198 = vector.multi_reduction <maximumf>, %197, %cst_42 [2] : vector<8x8x8xf32> to vector<8x8xf32>
    %199 = vector.shape_cast %198 : vector<8x8xf32> to vector<8x8x1xf32>
    %200 = vector.broadcast %199 : vector<8x8x1xf32> to vector<8x8x8xf32>
    %201 = arith.subf %197, %200 : vector<8x8x8xf32>
    %202 = math.exp %201 : vector<8x8x8xf32>
    %cst_43 = arith.constant dense<0.000000e+00> : vector<8x8xf32>
    %203 = vector.multi_reduction <add>, %202, %cst_43 [2] : vector<8x8x8xf32> to vector<8x8xf32>
    %204 = vector.shape_cast %203 : vector<8x8xf32> to vector<8x8x1xf32>
    %205 = tpu.reciprocal %204 {approx = true} : vector<8x8x1xf32> -> vector<8x8x1xf32>
    %206 = vector.broadcast %205 : vector<8x8x1xf32> to vector<8x8x8xf32>
    %207 = arith.mulf %202, %206 : vector<8x8x8xf32>
    "tpu.trace_start"() <{level = 10 : i32, message = "bqk,bkd->bqd"}> : () -> ()
    %cst_44 = arith.constant dense<0.000000e+00> : vector<8x8x8xf32>
    %208 = tpu.matmul %207, %196, %cst_44 {dimension_numbers = #tpu.dot_dimension_numbers<[2], [1], [1], [2], [0, 0, 0, 1, 1, 2], [0], [0]>} : vector<8x8x8xf32>, vector<8x8x8xf32>, vector<8x8x8xf32> -> vector<8x8x8xf32>
    "tpu.trace_stop"() : () -> ()
    %209 = vector.extract_strided_slice %208 {offsets = [0, 0, 0], sizes = [2, 8, 8], strides = [1, 1, 1]} : vector<8x8x8xf32> to vector<2x8x8xf32>
    %210 = vector.shape_cast %209 : vector<2x8x8xf32> to vector<16x8xf32>
    %211 = vector.extract_strided_slice %208 {offsets = [2, 0, 0], sizes = [2, 8, 8], strides = [1, 1, 1]} : vector<8x8x8xf32> to vector<2x8x8xf32>
    %212 = vector.shape_cast %211 : vector<2x8x8xf32> to vector<16x8xf32>
    %213 = vector.extract_strided_slice %208 {offsets = [4, 0, 0], sizes = [2, 8, 8], strides = [1, 1, 1]} : vector<8x8x8xf32> to vector<2x8x8xf32>
    %214 = vector.shape_cast %213 : vector<2x8x8xf32> to vector<16x8xf32>
    %215 = vector.extract_strided_slice %208 {offsets = [6, 0, 0], sizes = [2, 8, 8], strides = [1, 1, 1]} : vector<8x8x8xf32> to vector<2x8x8xf32>
    %216 = vector.shape_cast %215 : vector<2x8x8xf32> to vector<16x8xf32>
    %217 = tpu.concatenate %210, %212, %214, %216 in 1 : vector<16x8xf32>, vector<16x8xf32>, vector<16x8xf32>, vector<16x8xf32> -> vector<16x32xf32>
    %cst_45 = arith.constant dense<0.000000e+00> : vector<16x32xf32>
    %218 = tpu.matmul %217, %158, %cst_45 {dimension_numbers = #tpu.dot_dimension_numbers<[1], [0], [0], [1], [0, 0, 1, 1], [], []>} : vector<16x32xf32>, vector<32x32xf32>, vector<16x32xf32> -> vector<16x32xf32>
    %219 = vector.extract_strided_slice %163 {offsets = [1, 0], sizes = [1, 32], strides = [1, 1]} : vector<8x128xf32> to vector<1x32xf32>
    %220 = vector.shape_cast %219 : vector<1x32xf32> to vector<32xf32>
    %221 = vector.shape_cast %220 : vector<32xf32> to vector<1x32xf32>
    %222 = vector.broadcast %221 : vector<1x32xf32> to vector<16x32xf32>
    %223 = arith.addf %218, %222 : vector<16x32xf32>
    %224 = arith.addf %154, %223 : vector<16x32xf32>
    %225 = vector.extract_strided_slice %163 {offsets = [4, 0], sizes = [1, 32], strides = [1, 1]} : vector<8x128xf32> to vector<1x32xf32>
    %226 = vector.shape_cast %225 : vector<1x32xf32> to vector<32xf32>
    %227 = vector.extract_strided_slice %163 {offsets = [5, 0], sizes = [1, 32], strides = [1, 1]} : vector<8x128xf32> to vector<1x32xf32>
    %228 = vector.shape_cast %227 : vector<1x32xf32> to vector<32xf32>
    %cst_46 = arith.constant dense<0.000000e+00> : vector<16xf32>
    %229 = vector.multi_reduction <add>, %224, %cst_46 [1] : vector<16x32xf32> to vector<16xf32>
    %230 = vector.shape_cast %229 : vector<16xf32> to vector<16x1xf32>
    %cst_47 = arith.constant 3.200000e+01 : f32
    %231 = vector.broadcast %cst_47 : f32 to vector<16x1xf32>
    %232 = arith.divf %230, %231 : vector<16x1xf32>
    %233 = vector.broadcast %232 : vector<16x1xf32> to vector<16x32xf32>
    %234 = arith.subf %224, %233 : vector<16x32xf32>
    %235 = arith.mulf %234, %234 : vector<16x32xf32>
    %cst_48 = arith.constant dense<0.000000e+00> : vector<16xf32>
    %236 = vector.multi_reduction <add>, %235, %cst_48 [1] : vector<16x32xf32> to vector<16xf32>
    %237 = vector.shape_cast %236 : vector<16xf32> to vector<16x1xf32>
    %cst_49 = arith.constant 3.200000e+01 : f32
    %238 = vector.broadcast %cst_49 : f32 to vector<16x1xf32>
    %239 = arith.divf %237, %238 : vector<16x1xf32>
    %240 = vector.broadcast %232 : vector<16x1xf32> to vector<16x32xf32>
    %241 = arith.subf %224, %240 : vector<16x32xf32>
    %cst_50 = arith.constant 9.99999974E-6 : f32
    %242 = vector.broadcast %cst_50 : f32 to vector<16x1xf32>
    %243 = arith.addf %239, %242 : vector<16x1xf32>
    %244 = math.rsqrt %243 : vector<16x1xf32>
    %245 = vector.broadcast %244 : vector<16x1xf32> to vector<16x32xf32>
    %246 = arith.mulf %241, %245 : vector<16x32xf32>
    %247 = vector.shape_cast %226 : vector<32xf32> to vector<1x32xf32>
    %248 = vector.broadcast %247 : vector<1x32xf32> to vector<16x32xf32>
    %249 = arith.mulf %246, %248 : vector<16x32xf32>
    %250 = vector.shape_cast %228 : vector<32xf32> to vector<1x32xf32>
    %251 = vector.broadcast %250 : vector<1x32xf32> to vector<16x32xf32>
    %252 = arith.addf %249, %251 : vector<16x32xf32>
    %cst_51 = arith.constant dense<0.000000e+00> : vector<16x128xf32>
    %253 = tpu.matmul %252, %159, %cst_51 {dimension_numbers = #tpu.dot_dimension_numbers<[1], [0], [0], [1], [0, 0, 1, 1], [], []>} : vector<16x32xf32>, vector<32x128xf32>, vector<16x128xf32> -> vector<16x128xf32>
    %254 = vector.extract_strided_slice %163 {offsets = [2, 0], sizes = [1, 128], strides = [1, 1]} : vector<8x128xf32> to vector<1x128xf32>
    %255 = vector.shape_cast %254 : vector<1x128xf32> to vector<128xf32>
    %256 = vector.shape_cast %255 : vector<128xf32> to vector<1x128xf32>
    %257 = vector.broadcast %256 : vector<1x128xf32> to vector<16x128xf32>
    %258 = arith.addf %253, %257 : vector<16x128xf32>
    %cst_52 = arith.constant 0.000000e+00 : f32
    %259 = vector.broadcast %cst_52 : f32 to vector<16x128xf32>
    %260 = arith.maximumf %258, %259 : vector<16x128xf32>
    %cst_53 = arith.constant dense<0.000000e+00> : vector<16x32xf32>
    %261 = tpu.matmul %260, %161, %cst_53 {dimension_numbers = #tpu.dot_dimension_numbers<[1], [0], [0], [1], [0, 0, 1, 1], [], []>} : vector<16x128xf32>, vector<128x32xf32>, vector<16x32xf32> -> vector<16x32xf32>
    %262 = vector.extract_strided_slice %163 {offsets = [3, 0], sizes = [1, 32], strides = [1, 1]} : vector<8x128xf32> to vector<1x32xf32>
    %263 = vector.shape_cast %262 : vector<1x32xf32> to vector<32xf32>
    %264 = vector.shape_cast %263 : vector<32xf32> to vector<1x32xf32>
    %265 = vector.broadcast %264 : vector<1x32xf32> to vector<16x32xf32>
    %266 = arith.addf %261, %265 : vector<16x32xf32>
    %267 = arith.addf %252, %266 : vector<16x32xf32>
    %268 = vector.extract_strided_slice %163 {offsets = [6, 0], sizes = [1, 32], strides = [1, 1]} : vector<8x128xf32> to vector<1x32xf32>
    %269 = vector.shape_cast %268 : vector<1x32xf32> to vector<32xf32>
    %270 = vector.extract_strided_slice %163 {offsets = [7, 0], sizes = [1, 32], strides = [1, 1]} : vector<8x128xf32> to vector<1x32xf32>
    %271 = vector.shape_cast %270 : vector<1x32xf32> to vector<32xf32>
    %cst_54 = arith.constant dense<0.000000e+00> : vector<16xf32>
    %272 = vector.multi_reduction <add>, %267, %cst_54 [1] : vector<16x32xf32> to vector<16xf32>
    %273 = vector.shape_cast %272 : vector<16xf32> to vector<16x1xf32>
    %cst_55 = arith.constant 3.200000e+01 : f32
    %274 = vector.broadcast %cst_55 : f32 to vector<16x1xf32>
    %275 = arith.divf %273, %274 : vector<16x1xf32>
    %276 = vector.broadcast %275 : vector<16x1xf32> to vector<16x32xf32>
    %277 = arith.subf %267, %276 : vector<16x32xf32>
    %278 = arith.mulf %277, %277 : vector<16x32xf32>
    %cst_56 = arith.constant dense<0.000000e+00> : vector<16xf32>
    %279 = vector.multi_reduction <add>, %278, %cst_56 [1] : vector<16x32xf32> to vector<16xf32>
    %280 = vector.shape_cast %279 : vector<16xf32> to vector<16x1xf32>
    %cst_57 = arith.constant 3.200000e+01 : f32
    %281 = vector.broadcast %cst_57 : f32 to vector<16x1xf32>
    %282 = arith.divf %280, %281 : vector<16x1xf32>
    %283 = vector.broadcast %275 : vector<16x1xf32> to vector<16x32xf32>
    %284 = arith.subf %267, %283 : vector<16x32xf32>
    %cst_58 = arith.constant 9.99999974E-6 : f32
    %285 = vector.broadcast %cst_58 : f32 to vector<16x1xf32>
    %286 = arith.addf %282, %285 : vector<16x1xf32>
    %287 = math.rsqrt %286 : vector<16x1xf32>
    %288 = vector.broadcast %287 : vector<16x1xf32> to vector<16x32xf32>
    %289 = arith.mulf %284, %288 : vector<16x32xf32>
    %290 = vector.shape_cast %269 : vector<32xf32> to vector<1x32xf32>
    %291 = vector.broadcast %290 : vector<1x32xf32> to vector<16x32xf32>
    %292 = arith.mulf %289, %291 : vector<16x32xf32>
    %293 = vector.shape_cast %271 : vector<32xf32> to vector<1x32xf32>
    %294 = vector.broadcast %293 : vector<1x32xf32> to vector<16x32xf32>
    %295 = arith.addf %292, %294 : vector<16x32xf32>
    %296 = vector.shape_cast %295 : vector<16x32xf32> to vector<2x8x32xf32>
    %cst_59 = arith.constant dense<0.000000e+00> : vector<2x32xf32>
    %297 = vector.multi_reduction <add>, %296, %cst_59 [1] : vector<2x8x32xf32> to vector<2x32xf32>
    %cst_60 = arith.constant 8.000000e+00 : f32
    %298 = vector.broadcast %cst_60 : f32 to vector<2x32xf32>
    %299 = arith.divf %297, %298 : vector<2x32xf32>
    %cst_61 = arith.constant dense<0.000000e+00> : vector<2x3xf32>
    %300 = tpu.matmul %299, %9, %cst_61 {dimension_numbers = #tpu.dot_dimension_numbers<[1], [0], [0], [1], [0, 0, 1, 1], [], []>} : vector<2x32xf32>, vector<32x3xf32>, vector<2x3xf32> -> vector<2x3xf32>
    %301 = vector.shape_cast %7 : vector<3xf32> to vector<1x3xf32>
    %302 = vector.broadcast %301 : vector<1x3xf32> to vector<2x3xf32>
    %303 = arith.addf %300, %302 : vector<2x3xf32>
    %cst_62 = arith.constant dense<0xFF800000> : vector<2xf32>
    %304 = vector.multi_reduction <maximumf>, %303, %cst_62 [1] : vector<2x3xf32> to vector<2xf32>
    %305 = vector.shape_cast %304 : vector<2xf32> to vector<2x1xf32>
    %306 = vector.broadcast %305 : vector<2x1xf32> to vector<2x3xf32>
    %307 = arith.subf %303, %306 : vector<2x3xf32>
    %308 = math.exp %307 : vector<2x3xf32>
    %cst_63 = arith.constant dense<0.000000e+00> : vector<2xf32>
    %309 = vector.multi_reduction <add>, %308, %cst_63 [1] : vector<2x3xf32> to vector<2xf32>
    %310 = vector.shape_cast %309 : vector<2xf32> to vector<2x1xf32>
    %311 = vector.broadcast %310 : vector<2x1xf32> to vector<2x3xf32>
    %312 = arith.divf %308, %311 : vector<2x3xf32>
    %c0_64 = arith.constant 0 : index
    %c0_65 = arith.constant 0 : index
    %313 = vector.load %arg5[%c0_64, %c0_65] : memref<2x3xf32, #tpu.memory_space<vmem>>, vector<2x3xf32>
    tpu.vector_store %arg5[%c0_64, %c0_65], %312 {strides = array<i32>} : memref<2x3xf32, #tpu.memory_space<vmem>>, vector<2x3xf32>,
    return
  }
}

</mosaic_0001>

<bundles_post_ra>
// kernel: transformer_gating_forward.1
= control target key start
LH: loop header
LB: loop body
LE: loop exit
PB: predicated region body
PF: predicated region fallthrough
CT: control target
= control target key end

     0   :  { %vm34_vm0 = vcmask 130048   ;;  %s5378_s0 = inlined_call_operand.vmem [shape: f32[16,16], index: 0, kind: input, shape index: {}]   ;;  %s5379_s1 = inlined_call_operand.vmem [shape: f32[2,32,32], index: 1, kind: input, shape index: {}]   ;;  %s5380_s2 = inlined_call_operand.vmem [shape: f32[2,32,384], index: 2, kind: input, shape index: {}]   ;;  %s5381_s3 = inlined_call_operand.vmem [shape: f32[2,128,32], index: 3, kind: input, shape index: {}]   ;;  %s5382_s4 = inlined_call_operand.vmem [shape: f32[2,8,128], index: 4, kind: input, shape index: {}]   ;;  %s5383_s5 = inlined_call_operand.hbm [shape: f32[2,3], index: 5, kind: output, shape index: {}]  }
   0x1   :  { %v23_v0 = vld [vmem:[%s5379_s1] sm:$0xff]  ;;  %v24_v1 = vld [vmem:[%s5379_s1 + $0x8] sm:$0xff]  ;;  %v119_v5 = vld [vmem:[%s5380_s2 + $0x18] sm:$0xff] }
   0x2   :  { %v21_v2 = vld [vmem:[%s5378_s0] sm:$0xff]  ;;  %v4384_v3 = vpack.c.bf16 %v24_v1, %v23_v0 }
   0x3   :  { %4074 = vmatprep.mubr.msk.f32.mxu0 %vm34_vm0, %v21_v2  ;;  %v116_v4 = vld [vmem:[%s5380_s2] sm:$0xff] }
   0x4   :  { %v4388_v6 = vpack.c.bf16 %v119_v5, %v116_v4 }
   0x5   :  { %10 = vsyncpa [#allocation3], 0  ;;  %4385 = vmatprep.subr.bf16.mxu0 %v4384_v3  ;;  %v22_v7 = vld [vmem:[%s5378_s0 + $0x8] sm:$0xff]  ;;  %v122_v8 = vld [vmem:[%s5380_s2 + $0x30] sm:$0xff]  ;;  %v30_v11 = vlaneseq  ;;  %vm149_vm1 = vcmask 261120   ;;  %v4627_v23 = vmov 0.0  }
   0x6   :  { %4387 = vmatpush3.bf16.msra.mxu0 %v4384_v3  ;;  %v125_v9 = vld [vmem:[%s5380_s2 + $0x48] sm:$0xff]  ;;  %v25_v14 = vld [vmem:[%s5379_s1 + $0x10] sm:$0xff]  ;;  %v4715_v20 = vld [vmem:[%s5382_s4] sm:$0xff]  ;;  %4098 = vmatprep.subr.mxu1 %v4627_v23  ;;  %s4628_s12 = smov 112   ;;  %s4629_s13 = smov 120   ;;  %vm4630_vm2 = vmmov 0  }
   0x7   :  { %4389 = vmatprep.subr.bf16.mxu0 %v4388_v6  ;;  %v4392_v10 = vpack.c.bf16 %v125_v9, %v122_v8  ;;  %v4695_v12 = vshrl.u32 %v30_v11, 7  ;;  %4100 = vmatprep.mubr.msk.f32.mxu1 %vm4630_vm2, %v4627_v23  ;;  %s4631_s14 = smov 104   ;;  %s4632_s15 = smov 96   ;;  %vm247_vm3 = vcmask 64512   ;;  %vm1578_vm4 = vcmask 195584  }
   0x8   :  { %s4633_s16 = smov 64   ;;  %s4634_s25 = smov 8   ;;  %vm3732_vm5 = vcmask 1041409   ;;  %vm3806_vm6 = vcmask 17408  }
   0x9   :  { %4075 = vmatmul.mubr.msk.f32.vlgmr.msra.gmra.mrb[0].mxu0 %vm34_vm0, %v22_v7  ;;  %v4698_v13 = vsub.s32 0, %v4695_v12  ;;  %s4635_s26 = smov 16   ;;  %s4636_s27 = smov 24  }
   0xa   :  { %4391 = vmatpush3.bf16.msra.mxu0 %v4388_v6 }
   0xb   :  { %4393 = vmatprep.subr.bf16.mxu0 %v4392_v10  ;;  %v33_v15 = vrot.slane %v25_v14, %v4698_v13  ;;  %v148_v21 = vrot.slane %v4715_v20, %v4698_v13 }
   0xe   :  { %4395 = vmatpush3.bf16.msra.mxu0 %v4392_v10 }
   0xf   :  { %4088 = vmatprep.subr.mxu0 %v4627_v23 }
  0xdc   :  { %v4076_v16 = vpop.f32.mrb[0].mxu0 }
  0xdd   :  { %v107_v17 = vpop.f32.mrb[1].mxu0  ;;  %v4706_v19 = vadd.f32 %v4076_v16, %v33_v15 }
  0xde   :  { %v4704_v18 = vadd.f32 %v107_v17, %v33_v15 }
  0xe0   :  { %4085 = vmatprep.mubr.msk.f32.mxu0 %vm149_vm1, %v4704_v18 }
  0xe1   :  { %4086 = vmatmul.mubr.msk.f32.vlgmr.msra.gmra.mrb[2].mxu0 %vm149_vm1, %v4706_v19 }
  0xe2   :  { %4090 = vmatprep.mubr.msk.f32.mxu0 %vm4630_vm2, %v4627_v23 }
 0x1b4   :  { %v4087_v22 = vpop.f32.mrb[2].mxu0 }
 0x1b5   :  { %v222_v24 = vpop.f32.mrb[3].mxu0  ;;  %v4731_v26 = vadd.f32 %v4087_v22, %v148_v21 }
 0x1b6   :  { %v4721_v25 = vadd.f32 %v222_v24, %v148_v21 }
 0x1b8   :  { %237 = vrot.lane.b32.xlu1 %v4721_v25, %s4628_s12  ;;  %233 = vrot.lane.b32.xlu0 %v4721_v25, %s4629_s13 }
 0x1bc   :  { %239 = vrot.lane.b32.xlu1 %v4731_v26, %s4628_s12  ;;  %235 = vrot.lane.b32.xlu0 %v4731_v26, %s4629_s13 }
 0x1c0   :  { %243 = vrot.lane.b32.xlu1 %v4731_v26, %s4631_s14  ;;  %241 = vrot.lane.b32.xlu0 %v4721_v25, %s4631_s14 }
 0x1c4   :  { %322 = vrot.lane.b32.xlu1 %v4731_v26, %s4632_s15  ;;  %245 = vrot.lane.b32.xlu0 %v4721_v25, %s4632_s15 }
 0x22a   :  { %v4745_v27 = vpop.permute.xlu1 %237  ;;  %v4747_v28 = vpop.permute.xlu0 %233 }
 0x22b   :  { %398 = vrot.lane.b32.xlu0 %v4747_v28, %s4632_s15 }
 0x22e   :  { %v4751_v29 = vpop.permute.xlu1 %239  ;;  %v4753_v30 = vpop.permute.xlu0 %235 }
 0x22f   :  { %550 = vrot.lane.b32.xlu0 %v4745_v27, %s4632_s15  ;;  %474 = vrot.lane.b32.xlu1 %v4753_v30, %s4632_s15 }
 0x232   :  { %v4759_v31 = vpop.permute.xlu0 %241  ;;  %v4765_v32 = vpop.permute.xlu1 %243 }
 0x233   :  { %626 = vrot.lane.b32.xlu1 %v4751_v29, %s4632_s15  ;;  %702 = vrot.lane.b32.xlu0 %v4759_v31, %s4632_s15 }
 0x236   :  { %v246_v33 = vpop.permute.xlu0 %245  ;;  %v323_v34 = vpop.permute.xlu1 %322 }
 0x237   :  { %778 = vrot.lane.b32.xlu1 %v4765_v32, %s4632_s15  ;;  %4089 = vmatpush3.xpose.msk.msra.mxu0 %vm247_vm3, %v246_v33 }
 0x238   :  { %4093 = vmatprep.subr.mxu0 %v4627_v23 }
 0x23a   :  { %4091 = vmatmul.mubr.msk.f32.vlgmr.msra.gmra.mrb[4].mxu0 %vm247_vm3, %v4721_v25 }
 0x23b   :  { %4094 = vmatpush3.xpose.msk.msra.mxu0 %vm247_vm3, %v323_v34  ;;  %4095 = vmatprep.mubr.msk.f32.mxu0 %vm4630_vm2, %v4627_v23 }
 0x23c   :  { %4103 = vmatprep.subr.mxu0 %v4627_v23 }
 0x23e   :  { %4096 = vmatmul.mubr.msk.f32.vlgmr.msra.gmra.mrb[6].mxu0 %vm247_vm3, %v4731_v26 }
 0x23f   :  { %4105 = vmatprep.mubr.msk.f32.mxu0 %vm4630_vm2, %v4627_v23 }
 0x29d   :  { %v399_v35 = vpop.permute.xlu0 %398 }
 0x29e   :  { %4099 = vmatpush3.xpose.msk.msra.mxu1 %vm247_vm3, %v399_v35 }
 0x29f   :  { %4108 = vmatprep.subr.mxu1 %v4627_v23 }
 0x2a1   :  { %v475_v36 = vpop.permute.xlu1 %474  ;;  %4101 = vmatmul.mubr.msk.f32.vlgmr.msra.gmra.mrb[0].mxu1 %vm247_vm3, %v4747_v28  ;;  %v551_v37 = vpop.permute.xlu0 %550 }
 0x2a2   :  { %4104 = vmatpush3.xpose.msk.msra.mxu0 %vm247_vm3, %v475_v36  ;;  %4109 = vmatpush3.xpose.msk.msra.mxu1 %vm247_vm3, %v551_v37 }
 0x2a3   :  { %4110 = vmatprep.mubr.msk.f32.mxu1 %vm4630_vm2, %v4627_v23  ;;  %4113 = vmatprep.subr.mxu0 %v4627_v23 }
 0x2a4   :  { %4118 = vmatprep.subr.mxu1 %v4627_v23 }
 0x2a5   :  { %v627_v38 = vpop.permute.xlu1 %626  ;;  %4106 = vmatmul.mubr.msk.f32.vlgmr.msra.gmra.mrb[8].mxu0 %vm247_vm3, %v4753_v30  ;;  %4111 = vmatmul.mubr.msk.f32.vlgmr.msra.gmra.mrb[2].mxu1 %vm247_vm3, %v4745_v27  ;;  %v703_v39 = vpop.permute.xlu0 %702 }
 0x2a6   :  { %4114 = vmatpush3.xpose.msk.msra.mxu0 %vm247_vm3, %v627_v38  ;;  %4119 = vmatpush3.xpose.msk.msra.mxu1 %vm247_vm3, %v703_v39 }
 0x2a7   :  { %4115 = vmatprep.mubr.msk.f32.mxu0 %vm4630_vm2, %v4627_v23  ;;  %4120 = vmatprep.mubr.msk.f32.mxu1 %vm4630_vm2, %v4627_v23 }
 0x2a8   :  { %4123 = vmatprep.subr.mxu0 %v4627_v23  ;;  %4128 = vmatprep.subr.mxu1 %v4627_v23 }
 0x2a9   :  { %v779_v40 = vpop.permute.xlu1 %778  ;;  %4116 = vmatmul.mubr.msk.f32.vlgmr.msra.gmra.mrb[10].mxu0 %vm247_vm3, %v4751_v29  ;;  %4121 = vmatmul.mubr.msk.f32.vlgmr.msra.gmra.mrb[4].mxu1 %vm247_vm3, %v4759_v31 }
 0x2aa   :  { %4124 = vmatpush3.xpose.msk.msra.mxu0 %vm247_vm3, %v779_v40  ;;  %4125 = vmatprep.mubr.msk.f32.mxu0 %vm4630_vm2, %v4627_v23 }
 0x2ab   :  { %4133 = vmatprep.subr.mxu0 %v4627_v23  ;;  %4130 = vmatprep.mubr.msk.f32.mxu1 %vm4630_vm2, %v4627_v23 }
 0x2ad   :  { %4126 = vmatmul.mubr.msk.f32.vlgmr.msra.gmra.mrb[12].mxu0 %vm247_vm3, %v4765_v32 }
 0x2ae   :  { %4135 = vmatprep.mubr.msk.f32.mxu0 %vm4630_vm2, %v4627_v23 }
 0x30d   :  { %v318_v41 = vpop.f32.mrb[4].mxu0 }
 0x30e   :  { %v4092_v42 = vpop.f32.mrb[5].mxu0  ;;  %v854_v43 = vsel %vm247_vm3, %v318_v41, -inf }
 0x30f   :  { %855 = vmax.xlane.f32.xlu0 %v854_v43 }
 0x311   :  { %v394_v44 = vpop.f32.mrb[6].mxu0 }
 0x312   :  { %v4097_v45 = vpop.f32.mrb[7].mxu0  ;;  %v857_v46 = vsel %vm247_vm3, %v394_v44, -inf }
 0x313   :  { %858 = vmax.xlane.f32.xlu1 %v857_v46 }
 0x374   :  { %v470_v47 = vpop.f32.mrb[0].mxu1 }
 0x375   :  { %v4102_v48 = vpop.f32.mrb[1].mxu1  ;;  %v860_v49 = vsel %vm247_vm3, %v470_v47, -inf }
 0x376   :  { %861 = vmax.xlane.f32.xlu0 %v860_v49 }
 0x378   :  { %v546_v50 = vpop.f32.mrb[8].mxu0  ;;  %v622_v51 = vpop.f32.mrb[2].mxu1 }
 0x379   :  { %v4107_v52 = vpop.f32.mrb[9].mxu0  ;;  %v4112_v53 = vpop.f32.mrb[3].mxu1  ;;  %v863_v54 = vsel %vm247_vm3, %v546_v50, -inf  ;;  %v866_v55 = vsel %vm247_vm3, %v622_v51, -inf }
 0x37a   :  { %864 = vmax.xlane.f32.xlu0 %v863_v54  ;;  %867 = vmax.xlane.f32.xlu1 %v866_v55 }
 0x37c   :  { %v698_v56 = vpop.f32.mrb[10].mxu0  ;;  %v774_v57 = vpop.f32.mrb[4].mxu1 }
 0x37d   :  { %v4117_v58 = vpop.f32.mrb[11].mxu0  ;;  %v4122_v59 = vpop.f32.mrb[5].mxu1  ;;  %v869_v60 = vsel %vm247_vm3, %v698_v56, -inf  ;;  %v872_v61 = vsel %vm247_vm3, %v774_v57, -inf }
 0x37e   :  { %870 = vmax.xlane.f32.xlu0 %v869_v60  ;;  %873 = vmax.xlane.f32.xlu1 %v872_v61 }
 0x380   :  { %v850_v62 = vpop.f32.mrb[12].mxu0 }
 0x381   :  { %v4127_v63 = vpop.f32.mrb[13].mxu0  ;;  %v875_v0 = vsel %vm247_vm3, %v850_v62, -inf }
 0x382   :  { %876 = vmax.xlane.f32.xlu0 %v875_v0 }
 0x38f   :  { %942 = vrot.lane.b32.xlu1 %v4721_v25, %s4633_s16 }
 0x393   :  { %1094 = vrot.lane.b32.xlu1 %v4747_v28, %s4633_s16 }
 0x397   :  { %1170 = vrot.lane.b32.xlu1 %v4753_v30, %s4633_s16 }
 0x398   :  { %1018 = vrot.lane.b32.xlu0 %v4731_v26, %s4633_s16 }
 0x39b   :  { %1322 = vrot.lane.b32.xlu1 %v4751_v29, %s4633_s16 }
 0x39c   :  { %1246 = vrot.lane.b32.xlu0 %v4745_v27, %s4633_s16  ;;  %v856_v3 = vpop.xlane.xlu0 %855 }
 0x39d   :  { %v878_v4 = vsub.f32 %v318_v41, %v856_v3 }
 0x39f   :  { %v886_v6 = vmul.f32 1.442695, %v878_v4 }
 0x3a0   :  { %v859_v1 = vpop.xlane.xlu1 %858 }
 0x3a1   :  { %v879_v2 = vsub.f32 %v394_v44, %v859_v1 }
 0x3a3   :  { %v888_v5 = vmul.f32 1.442695, %v879_v2 }
 0x3a5   :  { %4518 = vpow2.f32 %v888_v5 }
 0x3a6   :  { %4520 = vpow2.f32 %v886_v6 }
 0x3af   :  { %v4837_v7 = vpop.eup %4518 }
 0x3b0   :  { %v905_v8 = vsel %vm247_vm3, %v4837_v7, 0.0  ;;  %v4841_v9 = vpop.eup %4520 }
 0x3b1   :  { %v902_v10 = vsel %vm247_vm3, %v4841_v9, 0.0 }
 0x3bb   :  { %906 = vadd.xlane.f32.xlu0 %v905_v8 }
 0x3bf   :  { %903 = vadd.xlane.f32.xlu1 %v902_v10 }
 0x403   :  { %v862_v11 = vpop.xlane.xlu0 %861 }
 0x404   :  { %v880_v14 = vsub.f32 %v470_v47, %v862_v11 }
 0x406   :  { %v890_v15 = vmul.f32 1.442695, %v880_v14 }
 0x407   :  { %v868_v16 = vpop.xlane.xlu1 %867  ;;  %v865_v17 = vpop.xlane.xlu0 %864 }
 0x408   :  { %4522 = vpow2.f32 %v890_v15  ;;  %v882_v21 = vsub.f32 %v622_v51, %v868_v16  ;;  %v881_v22 = vsub.f32 %v546_v50, %v865_v17 }
 0x40a   :  { %v894_v24 = vmul.f32 1.442695, %v882_v21  ;;  %v892_v25 = vmul.f32 1.442695, %v881_v22 }
 0x40b   :  { %v874_v26 = vpop.xlane.xlu1 %873  ;;  %v871_v27 = vpop.xlane.xlu0 %870 }
 0x40c   :  { %4524 = vpow2.f32 %v894_v24  ;;  %v884_v28 = vsub.f32 %v774_v57, %v874_v26  ;;  %v883_v29 = vsub.f32 %v698_v56, %v871_v27  ;;  %v120_v26 = vld [vmem:[%s5380_s2 + $0x20] sm:$0xff] }
 0x40d   :  { %4526 = vpow2.f32 %v892_v25  ;;  %v117_v25 = vld [vmem:[%s5380_s2 + $0x8] sm:$0xff] }
 0x40e   :  { %v898_v30 = vmul.f32 1.442695, %v884_v28  ;;  %v896_v33 = vmul.f32 1.442695, %v883_v29  ;;  %v4396_v27 = vpack.c.bf16 %v120_v26, %v117_v25  ;;  %v123_v28 = vld [vmem:[%s5380_s2 + $0x38] sm:$0xff]  ;;  %v126_v29 = vld [vmem:[%s5380_s2 + $0x50] sm:$0xff] }
 0x40f   :  { %v943_v34 = vpop.permute.xlu1 %942  ;;  %v877_v35 = vpop.xlane.xlu0 %876  ;;  %v131_v25 = vld [vmem:[%s5381_s3 + $0x18] sm:$0xff] }
 0x410   :  { %4528 = vpow2.f32 %v898_v30  ;;  %v885_v36 = vsub.f32 %v850_v62, %v877_v35  ;;  %4129 = vmatpush3.msra.mxu1 %v943_v34  ;;  %v4400_v30 = vpack.c.bf16 %v126_v29, %v123_v28  ;;  %v133_v28 = vld [vmem:[%s5381_s3 + $0x28] sm:$0xff] }
 0x411   :  { %4530 = vpow2.f32 %v896_v33  ;;  %4138 = vmatprep.subr.mxu1 %v4627_v23 }
 0x412   :  { %v4523_v37 = vpop.eup %4522  ;;  %v900_v38 = vmul.f32 1.442695, %v885_v36 }
 0x413   :  { %v1019_v39 = vpop.permute.xlu0 %1018  ;;  %v908_v40 = vsel %vm247_vm3, %v4523_v37, 0.0  ;;  %v1095_v51 = vpop.permute.xlu1 %1094 }
 0x414   :  { %4532 = vpow2.f32 %v900_v38  ;;  %909 = vadd.xlane.f32.xlu1 %v908_v40  ;;  %4134 = vmatpush3.msra.mxu0 %v1019_v39 }
 0x415   :  { %4143 = vmatprep.subr.mxu0 %v4627_v23 }
 0x416   :  { %v4525_v41 = vpop.eup %4524 }
 0x417   :  { %v4527_v42 = vpop.eup %4526  ;;  %v914_v43 = vsel %vm247_vm3, %v4525_v41, 0.0  ;;  %v1171_v52 = vpop.permute.xlu1 %1170 }
 0x418   :  { %915 = vadd.xlane.f32.xlu1 %v914_v43  ;;  %v911_v44 = vsel %vm247_vm3, %v4527_v42, 0.0  ;;  %v1247_v53 = vpop.permute.xlu0 %1246 }
 0x419   :  { %912 = vadd.xlane.f32.xlu0 %v911_v44 }
 0x41a   :  { %v4529_v45 = vpop.eup %4528 }
 0x41b   :  { %v4531_v46 = vpop.eup %4530  ;;  %v920_v47 = vsel %vm247_vm3, %v4529_v45, 0.0  ;;  %v1323_v54 = vpop.permute.xlu1 %1322 }
 0x41c   :  { %921 = vadd.xlane.f32.xlu1 %v920_v47  ;;  %v917_v48 = vsel %vm247_vm3, %v4531_v46, 0.0 }
 0x41d   :  { %918 = vadd.xlane.f32.xlu0 %v917_v48 }
 0x41e   :  { %v4852_v49 = vpop.eup %4532 }
 0x41f   :  { %v923_v50 = vsel %vm247_vm3, %v4852_v49, 0.0 }
 0x421   :  { %924 = vadd.xlane.f32.xlu0 %v923_v50 }
 0x42d   :  { %1474 = vrot.lane.b32.xlu1 %v4765_v32, %s4633_s16 }
 0x437   :  { %1398 = vrot.lane.b32.xlu0 %v4759_v31, %s4633_s16 }
 0x448   :  { %v907_v55 = vpop.xlane.xlu0 %906 }
 0x449   :  { %4534 = vrcp.f32 %v907_v55 }
 0x44c   :  { %v904_v56 = vpop.xlane.xlu1 %903 }
 0x44d   :  { %4536 = vrcp.f32 %v904_v56 }
 0x453   :  { %v4535_v57 = vpop.eup %4534 }
 0x454   :  { %v935_v58 = vmul.f32 %v4535_v57, %v4837_v7  ;;  %v4914_v57 = vsub.s32 1, %v4695_v12 }
 0x456   :  { %4136 = vmatmul.mubr.msk.f32.vlgmr.msra.gmra.mrb[14].mxu0 %vm247_vm3, %v935_v58  ;;  %v1584_v58 = vrot.slane %v4715_v20, %v4914_v57 }
 0x457   :  { %v4537_v59 = vpop.eup %4536  ;;  %4144 = vmatpush3.msra.mxu0 %v1171_v52  ;;  %4145 = vmatprep.mubr.msk.f32.mxu0 %vm4630_vm2, %v4627_v23 }
 0x458   :  { %v934_v31 = vmul.f32 %v4537_v59, %v4841_v9  ;;  %4153 = vmatprep.subr.mxu0 %v4627_v23 }
 0x45a   :  { %4131 = vmatmul.mubr.msk.f32.vlgmr.msra.gmra.mrb[6].mxu1 %vm247_vm3, %v934_v31 }
 0x45b   :  { %4139 = vmatpush3.msra.mxu1 %v1095_v51  ;;  %4140 = vmatprep.mubr.msk.f32.mxu1 %vm4630_vm2, %v4627_v23 }
 0x45c   :  { %4148 = vmatprep.subr.mxu1 %v4627_v23 }
 0x4a1   :  { %v910_v32 = vpop.xlane.xlu1 %909 }
 0x4a2   :  { %4538 = vrcp.f32 %v910_v32 }
 0x4a5   :  { %v916_v60 = vpop.xlane.xlu1 %915 }
 0x4a6   :  { %4540 = vrcp.f32 %v916_v60  ;;  %v913_v61 = vpop.xlane.xlu0 %912 }
 0x4a7   :  { %4542 = vrcp.f32 %v913_v61 }
 0x4a9   :  { %v922_v62 = vpop.xlane.xlu1 %921 }
 0x4aa   :  { %4544 = vrcp.f32 %v922_v62  ;;  %v919_v63 = vpop.xlane.xlu0 %918 }
 0x4ab   :  { %4546 = vrcp.f32 %v919_v63 }
 0x4ac   :  { %v4539_v0 = vpop.eup %4538 }
 0x4ad   :  { %v936_v1 = vmul.f32 %v4539_v0, %v4523_v37  ;;  %v1475_v14 = vpop.permute.xlu1 %1474 }
 0x4ae   :  { %v925_v2 = vpop.xlane.xlu0 %924 }
 0x4af   :  { %4548 = vrcp.f32 %v925_v2  ;;  %4141 = vmatmul.mubr.msk.f32.vlgmr.msra.gmra.mrb[8].mxu1 %vm247_vm3, %v936_v1 }
 0x4b0   :  { %v4541_v3 = vpop.eup %4540  ;;  %4149 = vmatpush3.msra.mxu1 %v1247_v53  ;;  %4150 = vmatprep.mubr.msk.f32.mxu1 %vm4630_vm2, %v4627_v23 }
 0x4b1   :  { %v4543_v4 = vpop.eup %4542  ;;  %v938_v5 = vmul.f32 %v4541_v3, %v4525_v41  ;;  %4158 = vmatprep.subr.mxu1 %v4627_v23 }
 0x4b2   :  { %v937_v6 = vmul.f32 %v4543_v4, %v4527_v42  ;;  %v1399_v7 = vpop.permute.xlu0 %1398 }
 0x4b3   :  { %4151 = vmatmul.mubr.msk.f32.vlgmr.msra.gmra.mrb[10].mxu1 %vm247_vm3, %v938_v5 }
 0x4b4   :  { %v4545_v8 = vpop.eup %4544  ;;  %4146 = vmatmul.mubr.msk.f32.vlgmr.msra.gmra.mrb[16].mxu0 %vm247_vm3, %v937_v6  ;;  %4159 = vmatpush3.msra.mxu1 %v1399_v7 }
 0x4b5   :  { %v4547_v9 = vpop.eup %4546  ;;  %v940_v10 = vmul.f32 %v4545_v8, %v4529_v45  ;;  %4154 = vmatpush3.msra.mxu0 %v1323_v54  ;;  %4155 = vmatprep.mubr.msk.f32.mxu0 %vm4630_vm2, %v4627_v23 }
 0x4b6   :  { %v939_v11 = vmul.f32 %v4547_v9, %v4531_v46  ;;  %4160 = vmatprep.mubr.msk.f32.mxu1 %vm4630_vm2, %v4627_v23  ;;  %4163 = vmatprep.subr.mxu0 %v4627_v23  ;;  %v118_v9 = vld [vmem:[%s5380_s2 + $0x10] sm:$0xff] }
 0x4b7   :  { %4161 = vmatmul.mubr.msk.f32.vlgmr.msra.gmra.mrb[12].mxu1 %vm247_vm3, %v940_v10  ;;  %4397 = vmatprep.subr.bf16.mxu1 %v4396_v27  ;;  %v121_v10 = vld [vmem:[%s5380_s2 + $0x28] sm:$0xff] }
 0x4b8   :  { %4156 = vmatmul.mubr.msk.f32.vlgmr.msra.gmra.mrb[18].mxu0 %vm247_vm3, %v939_v11  ;;  %4399 = vmatpush3.bf16.msra.mxu1 %v4396_v27  ;;  %v4404_v11 = vpack.c.bf16 %v121_v10, %v118_v9  ;;  %v132_v27 = vld [vmem:[%s5381_s3 + $0x20] sm:$0xff] }
 0x4b9   :  { %v4549_v15 = vpop.eup %4548  ;;  %4164 = vmatpush3.msra.mxu0 %v1475_v14  ;;  %4165 = vmatprep.mubr.msk.f32.mxu0 %vm4630_vm2, %v4627_v23  ;;  %v124_v14 = vld [vmem:[%s5380_s2 + $0x40] sm:$0xff]  ;;  %v4420_v29 = vpack.c.bf16 %v133_v28, %v132_v27 }
 0x4ba   :  { %v941_v16 = vmul.f32 %v4549_v15, %v4852_v49  ;;  %4401 = vmatprep.subr.bf16.mxu1 %v4400_v30  ;;  %4405 = vmatprep.subr.bf16.mxu0 %v4404_v11  ;;  %v127_v15 = vld [vmem:[%s5380_s2 + $0x58] sm:$0xff] }
 0x4bc   :  { %4166 = vmatmul.mubr.msk.f32.vlgmr.msra.gmra.mrb[20].mxu0 %vm247_vm3, %v941_v16  ;;  %4403 = vmatpush3.bf16.msra.mxu1 %v4400_v30  ;;  %v4408_v16 = vpack.c.bf16 %v127_v15, %v124_v14  ;;  %v134_v30 = vld [vmem:[%s5381_s3 + $0x30] sm:$0xff] }
 0x4bd   :  { %4407 = vmatpush3.bf16.msra.mxu0 %v4404_v11 }
 0x4be   :  { %4409 = vmatprep.subr.bf16.mxu0 %v4408_v16 }
 0x4c1   :  { %4411 = vmatpush3.bf16.msra.mxu0 %v4408_v16 }
 0x529   :  { %v1090_v17 = vpop.f32.mrb[14].mxu0 }
 0x52a   :  { %v4137_v21 = vpop.f32.mrb[15].mxu0 }
 0x52b   :  { %v129_v21 = vld [vmem:[%s5381_s3 + $0x8] sm:$0xff] }
 0x52d   :  { %v1014_v22 = vpop.f32.mrb[6].mxu1 }
 0x52e   :  { %v4132_v24 = vpop.f32.mrb[7].mxu1 }
 0x582   :  { %v1166_v33 = vpop.f32.mrb[8].mxu1 }
 0x583   :  { %v4142_v34 = vpop.f32.mrb[9].mxu1  ;;  %1552 = vrot.lane.b32.xlu0 %v1166_v33, %s4634_s25  ;;  %v135_v33 = vld [vmem:[%s5381_s3 + $0x38] sm:$0xff] }
 0x584   :  { %v4424_v34 = vpack.c.bf16 %v135_v33, %v134_v30 }
 0x586   :  { %v1318_v35 = vpop.f32.mrb[10].mxu1 }
 0x587   :  { %v1242_v36 = vpop.f32.mrb[16].mxu0  ;;  %1560 = vrot.lane.b32.xlu0 %v1318_v35, %s4635_s26  ;;  %v4152_v37 = vpop.f32.mrb[11].mxu1  ;;  %v136_v35 = vld [vmem:[%s5381_s3 + $0x40] sm:$0xff] }
 0x588   :  { %1554 = vrot.lane.b32.xlu1 %v1242_v36, %s4634_s25  ;;  %v4147_v38 = vpop.f32.mrb[17].mxu0  ;;  %v137_v36 = vld [vmem:[%s5381_s3 + $0x48] sm:$0xff] }
 0x589   :  { %v4428_v37 = vpack.c.bf16 %v137_v36, %v136_v35  ;;  %v138_v38 = vld [vmem:[%s5381_s3 + $0x50] sm:$0xff]  ;;  %v3868_v35 = vld [vmem:[%s5380_s2 + $0x78] sm:$0xff] }
 0x58a   :  { %v1470_v39 = vpop.f32.mrb[12].mxu1 }
 0x58b   :  { %v1394_v40 = vpop.f32.mrb[18].mxu0  ;;  %1568 = vrot.lane.b32.xlu0 %v1470_v39, %s4636_s27  ;;  %v4162_v41 = vpop.f32.mrb[13].mxu1  ;;  %v139_v39 = vld [vmem:[%s5381_s3 + $0x58] sm:$0xff] }
 0x58c   :  { %1562 = vrot.lane.b32.xlu1 %v1394_v40, %s4635_s26  ;;  %v4157_v42 = vpop.f32.mrb[19].mxu0  ;;  %v4432_v40 = vpack.c.bf16 %v139_v39, %v138_v38  ;;  %v140_v41 = vld [vmem:[%s5381_s3 + $0x60] sm:$0xff]  ;;  %v3874_v38 = vld [vmem:[%s5380_s2 + $0xa8] sm:$0xff] }
 0x58d   :  { %v141_v42 = vld [vmem:[%s5381_s3 + $0x68] sm:$0xff] }
 0x58f   :  { %v1546_v43 = vpop.f32.mrb[20].mxu0 }
 0x590   :  { %1570 = vrot.lane.b32.xlu1 %v1546_v43, %s4636_s27  ;;  %v4167_v44 = vpop.f32.mrb[21].mxu0  ;;  %v4436_v43 = vpack.c.bf16 %v141_v42, %v140_v41 }
 0x5f5   :  { %v1553_v45 = vpop.permute.xlu0 %1552 }
 0x5f6   :  { %v1574_v48 = vsel %vm247_vm3, %v1014_v22, %v1553_v45  ;;  %v130_v22 = vld [vmem:[%s5381_s3 + $0x10] sm:$0xff] }
 0x5f7   :  { %v4416_v26 = vpack.c.bf16 %v131_v25, %v130_v22 }
 0x5f9   :  { %v1561_v46 = vpop.permute.xlu0 %1560 }
 0x5fa   :  { %v1555_v47 = vpop.permute.xlu1 %1554  ;;  %v1576_v49 = vsel %vm34_vm0, %v1574_v48, %v1561_v46 }
 0x5fb   :  { %v1575_v53 = vsel %vm247_vm3, %v1090_v17, %v1555_v47  ;;  %v128_v17 = vld [vmem:[%s5381_s3] sm:$0xff] }
 0x5fc   :  { %v4412_v24 = vpack.c.bf16 %v129_v21, %v128_v17 }
 0x5fd   :  { %v1569_v50 = vpop.permute.xlu0 %1568 }
 0x5fe   :  { %v1563_v51 = vpop.permute.xlu1 %1562  ;;  %v1579_v52 = vsel %vm1578_vm4, %v1576_v49, %v1569_v50  ;;  %4413 = vmatprep.subr.bf16.mxu1 %v4412_v24  ;;  %v1697_v50 = vsub.s32 4, %v4695_v12 }
 0x5ff   :  { %4176 = vmatprep.mubr.msk.f32.mxu1 %vm149_vm1, %v1579_v52  ;;  %v1577_v54 = vsel %vm34_vm0, %v1575_v53, %v1563_v51  ;;  %v1703_v51 = vsub.s32 5, %v4695_v12 }
 0x600   :  { %v1698_v52 = vrot.slane %v4715_v20, %v1697_v50 }
 0x602   :  { %v1571_v55 = vpop.permute.xlu1 %1570 }
 0x603   :  { %v1580_v56 = vsel %vm1578_vm4, %v1577_v54, %v1571_v55  ;;  %v1704_v55 = vrot.slane %v4715_v20, %v1703_v51 }
 0x604   :  { %4177 = vmatmul.mubr.msk.f32.vlgmr.msra.gmra.mrb[14].mxu1 %vm149_vm1, %v1580_v56 }
 0x605   :  { %4415 = vmatpush3.bf16.msra.mxu1 %v4412_v24 }
 0x606   :  { %4417 = vmatprep.subr.bf16.mxu1 %v4416_v26 }
 0x609   :  { %4419 = vmatpush3.bf16.msra.mxu1 %v4416_v26 }
 0x60a   :  { %4421 = vmatprep.subr.bf16.mxu1 %v4420_v29 }
 0x60d   :  { %4423 = vmatpush3.bf16.msra.mxu1 %v4420_v29 }
 0x60e   :  { %4425 = vmatprep.subr.bf16.mxu1 %v4424_v34 }
 0x611   :  { %4427 = vmatpush3.bf16.msra.mxu1 %v4424_v34  ;;  %v3865_v34 = vld [vmem:[%s5380_s2 + $0x60] sm:$0xff] }
 0x612   :  { %4429 = vmatprep.subr.bf16.mxu1 %v4428_v37  ;;  %v4444_v36 = vpack.c.bf16 %v3868_v35, %v3865_v34 }
 0x614   :  { %4445 = vmatprep.subr.bf16.mxu0 %v4444_v36 }
 0x615   :  { %4431 = vmatpush3.bf16.msra.mxu1 %v4428_v37  ;;  %v3871_v37 = vld [vmem:[%s5380_s2 + $0x90] sm:$0xff] }
 0x616   :  { %4433 = vmatprep.subr.bf16.mxu1 %v4432_v40  ;;  %v4448_v39 = vpack.c.bf16 %v3874_v38, %v3871_v37 }
 0x619   :  { %4435 = vmatpush3.bf16.msra.mxu1 %v4432_v40 }
 0x61a   :  { %4437 = vmatprep.subr.bf16.mxu1 %v4436_v43 }
 0x61d   :  { %4439 = vmatpush3.bf16.msra.mxu1 %v4436_v43 }
 0x6d7   :  { %v4178_v59 = vpop.f32.mrb[14].mxu1 }
 0x6d8   :  { %v1663_v31 = vadd.f32 %v4178_v59, %v1584_v58  ;;  %v1657_v32 = vpop.f32.mrb[15].mxu1 }
 0x6d9   :  { %v1658_v60 = vadd.f32 %v1657_v32, %v1584_v58 }
 0x6da   :  { %v1667_v61 = vadd.f32 %v1663_v31, %v4706_v19 }
 0x6db   :  { %v1666_v62 = vadd.f32 %v1658_v60, %v4704_v18 }
 0x6dc   :  { %v1671_v63 = vsel %vm149_vm1, %v1667_v61, 0.0 }
 0x6dd   :  { %1672 = vadd.xlane.f32.xlu1 %v1671_v63  ;;  %v1668_v0 = vsel %vm149_vm1, %v1666_v62, 0.0 }
 0x6de   :  { %1669 = vadd.xlane.f32.xlu0 %v1668_v0  ;;  %v1709_v0 = vsub.s32 2, %v4695_v12 }
 0x76a   :  { %v1673_v1 = vpop.xlane.xlu1 %1672 }
 0x76b   :  { %v1676_v2 = vmul.f32 0.03125, %v1673_v1  ;;  %v1670_v3 = vpop.xlane.xlu0 %1669  ;;  %v1710_v1 = vrot.slane %v4715_v20, %v1709_v0 }
 0x76c   :  { %v1675_v4 = vmul.f32 0.03125, %v1670_v3 }
 0x76d   :  { %v4922_v5 = vsub.f32 %v1667_v61, %v1676_v2  ;;  %v142_v61 = vld [vmem:[%s5381_s3 + $0x70] sm:$0xff] }
 0x76e   :  { %v4924_v6 = vsub.f32 %v1666_v62, %v1675_v4  ;;  %v143_v62 = vld [vmem:[%s5381_s3 + $0x78] sm:$0xff] }
 0x76f   :  { %v1680_v18 = vmul.f32 %v4922_v5, %v4922_v5  ;;  %v4440_v63 = vpack.c.bf16 %v143_v62, %v142_v61 }
 0x770   :  { %v1679_v7 = vmul.f32 %v4924_v6, %v4924_v6 }
 0x771   :  { %v1684_v8 = vsel %vm149_vm1, %v1680_v18, 0.0  ;;  %4441 = vmatprep.subr.bf16.mxu1 %v4440_v63 }
 0x772   :  { %v1681_v19 = vsel %vm149_vm1, %v1679_v7, 0.0  ;;  %4443 = vmatpush3.bf16.msra.mxu1 %v4440_v63 }
 0x773   :  { %1682 = vadd.xlane.f32.xlu0 %v1681_v19  ;;  %4266 = vmatprep.subr.mxu1 %v4627_v23  ;;  %v1796_v19 = vsub.s32 3, %v4695_v12 }
 0x775   :  { %v1797_v18 = vrot.slane %v4715_v20, %v1796_v19 }
 0x777   :  { %1685 = vadd.xlane.f32.xlu0 %v1684_v8 }
 0x800   :  { %v1683_v44 = vpop.xlane.xlu0 %1682 }
 0x801   :  { %v1687_v45 = vmul.f32 0.03125, %v1683_v44 }
 0x803   :  { %v1689_v46 = vadd.f32 1e-05, %v1687_v45 }
 0x804   :  { %v1686_v47 = vpop.xlane.xlu0 %1685 }
 0x805   :  { %4550 = vrsqrt.f32 %v1689_v46  ;;  %v1688_v48 = vmul.f32 0.03125, %v1686_v47  ;;  %v1903_v46 = vsub.s32 6, %v4695_v12  ;;  %v1909_v47 = vsub.s32 7, %v4695_v12 }
 0x807   :  { %v1690_v49 = vadd.f32 1e-05, %v1688_v48  ;;  %v1904_v48 = vrot.slane %v4715_v20, %v1903_v46 }
 0x809   :  { %4552 = vrsqrt.f32 %v1690_v49 }
 0x80f   :  { %v4551_v53 = vpop.eup %4550 }
 0x810   :  { %v1693_v54 = vmul.f32 %v4551_v53, %v4924_v6 }
 0x812   :  { %v1699_v56 = vmul.f32 %v1698_v52, %v1693_v54 }
 0x813   :  { %v4553_v58 = vpop.eup %4552 }
 0x814   :  { %v1694_v59 = vmul.f32 %v4553_v58, %v4922_v5  ;;  %v1705_v31 = vadd.f32 %v1704_v55, %v1699_v56 }
 0x816   :  { %v1700_v32 = vmul.f32 %v1698_v52, %v1694_v59  ;;  %4187 = vmatprep.mubr.msk.f32.mxu0 %vm149_vm1, %v1705_v31 }
 0x818   :  { %v1706_v60 = vadd.f32 %v1704_v55, %v1700_v32  ;;  %v1910_v55 = vrot.slane %v4715_v20, %v1909_v47  ;;  %v5053_v32 = vld [vmem:[%s5382_s4 + $0x8] sm:$0xff] }
 0x819   :  { %v1948_v20 = vrot.slane %v5053_v32, %v4698_v13 }
 0x81a   :  { %4188 = vmatmul.mubr.msk.f32.vlgmr.msra.gmra.mrb[22].mxu0 %vm149_vm1, %v1706_v60 }
 0x81b   :  { %4447 = vmatpush3.bf16.msra.mxu0 %v4444_v36 }
 0x81c   :  { %4449 = vmatprep.subr.bf16.mxu0 %v4448_v39 }
 0x81f   :  { %4451 = vmatpush3.bf16.msra.mxu0 %v4448_v39 }
 0x820   :  { %4236 = vmatprep.subr.mxu0 %v4627_v23 }
 0x8ed   :  { %v4189_v2 = vpop.f32.mrb[22].mxu0 }
 0x8ee   :  { %v1789_v3 = vadd.f32 %v4189_v2, %v1710_v1  ;;  %v1783_v4 = vpop.f32.mrb[23].mxu0 }
 0x8ef   :  { %v1784_v5 = vadd.f32 %v1783_v4, %v1710_v1 }
 0x8f0   :  { %v1793_v7 = vmax.f32 %v1789_v3, 0.0 }
 0x8f1   :  { %v1792_v6 = vmax.f32 %v1784_v5, 0.0 }
 0x8f3   :  { %4222 = vmatprep.mubr.f32.mxu1 %v1792_v6 }
 0x8f4   :  { %4223 = vmatmul.mubr.f32.vlgmr.msra.gmra.mrb[16].mxu1 %v1793_v7 }
 0x8f5   :  { %4268 = vmatprep.mubr.msk.f32.mxu1 %vm4630_vm2, %v4627_v23 }
 0x9c7   :  { %v4224_v8 = vpop.f32.mrb[16].mxu1 }
 0x9c8   :  { %v1870_v9 = vadd.f32 %v4224_v8, %v1797_v18  ;;  %v1864_v10 = vpop.f32.mrb[17].mxu1 }
 0x9c9   :  { %v1865_v11 = vadd.f32 %v1864_v10, %v1797_v18 }
 0x9ca   :  { %v1874_v14 = vadd.f32 %v1870_v9, %v1706_v60 }
 0x9cb   :  { %v1873_v15 = vadd.f32 %v1865_v11, %v1705_v31 }
 0x9cc   :  { %v1878_v16 = vsel %vm149_vm1, %v1874_v14, 0.0 }
 0x9cd   :  { %1879 = vadd.xlane.f32.xlu0 %v1878_v16  ;;  %v1875_v17 = vsel %vm149_vm1, %v1873_v15, 0.0 }
 0x9ce   :  { %1876 = vadd.xlane.f32.xlu1 %v1875_v17 }
 0xa5a   :  { %v1880_v21 = vpop.xlane.xlu0 %1879 }
 0xa5b   :  { %v1882_v22 = vmul.f32 0.03125, %v1880_v21  ;;  %v1877_v24 = vpop.xlane.xlu1 %1876 }
 0xa5c   :  { %v1881_v25 = vmul.f32 0.03125, %v1877_v24 }
 0xa5d   :  { %v1884_v26 = vsub.f32 %v1874_v14, %v1882_v22 }
 0xa5e   :  { %v1883_v27 = vsub.f32 %v1873_v15, %v1881_v25 }
 0xa5f   :  { %v1886_v28 = vmul.f32 %v1884_v26, %v1884_v26 }
 0xa60   :  { %v1885_v29 = vmul.f32 %v1883_v27, %v1883_v27 }
 0xa61   :  { %v1890_v30 = vsel %vm149_vm1, %v1886_v28, 0.0 }
 0xa62   :  { %1891 = vadd.xlane.f32.xlu0 %v1890_v30  ;;  %v1887_v33 = vsel %vm149_vm1, %v1885_v29, 0.0 }
 0xa63   :  { %1888 = vadd.xlane.f32.xlu1 %v1887_v33 }
 0xaef   :  { %v1892_v40 = vpop.xlane.xlu0 %1891 }
 0xaf0   :  { %v1894_v41 = vmul.f32 0.03125, %v1892_v40  ;;  %v1889_v42 = vpop.xlane.xlu1 %1888 }
 0xaf1   :  { %v1893_v43 = vmul.f32 0.03125, %v1889_v42 }
 0xaf2   :  { %v1896_v44 = vadd.f32 1e-05, %v1894_v41 }
 0xaf3   :  { %v1895_v45 = vadd.f32 1e-05, %v1893_v43 }
 0xaf4   :  { %4554 = vrsqrt.f32 %v1896_v44 }
 0xaf5   :  { %4556 = vrsqrt.f32 %v1895_v45 }
 0xafe   :  { %v4555_v49 = vpop.eup %4554 }
 0xaff   :  { %v4557_v52 = vpop.eup %4556  ;;  %v1900_v53 = vmul.f32 %v4555_v49, %v1884_v26 }
 0xb00   :  { %v1899_v54 = vmul.f32 %v4557_v52, %v1883_v27 }
 0xb01   :  { %v1906_v56 = vmul.f32 %v1904_v48, %v1900_v53 }
 0xb02   :  { %v1905_v58 = vmul.f32 %v1904_v48, %v1899_v54 }
 0xb03   :  { %v5042_v31 = vadd.f32 %v1910_v55, %v1906_v56 }
 0xb04   :  { %v5040_v59 = vadd.f32 %v1910_v55, %v1905_v58 }
 0xb06   :  { %4233 = vmatprep.mubr.msk.f32.mxu0 %vm149_vm1, %v5040_v59 }
 0xb07   :  { %4234 = vmatmul.mubr.msk.f32.vlgmr.msra.gmra.mrb[24].mxu0 %vm149_vm1, %v5042_v31 }
 0xb08   :  { %4238 = vmatprep.mubr.msk.f32.mxu0 %vm4630_vm2, %v4627_v23 }
 0xbda   :  { %v4235_v60 = vpop.f32.mrb[24].mxu0 }
 0xbdb   :  { %v5057_v61 = vadd.f32 %v4235_v60, %v1948_v20  ;;  %v2021_v62 = vpop.f32.mrb[25].mxu0 }
 0xbdc   :  { %v5059_v63 = vadd.f32 %v2021_v62, %v1948_v20 }
 0xbdd   :  { %2034 = vrot.lane.b32.xlu0 %v5057_v61, %s4629_s13 }
 0xbde   :  { %2032 = vrot.lane.b32.xlu1 %v5059_v63, %s4629_s13 }
 0xbe1   :  { %2040 = vrot.lane.b32.xlu0 %v5059_v63, %s4631_s14 }
 0xbe2   :  { %2036 = vrot.lane.b32.xlu1 %v5059_v63, %s4628_s12 }
 0xbe5   :  { %2044 = vrot.lane.b32.xlu0 %v5059_v63, %s4632_s15 }
 0xbe6   :  { %2038 = vrot.lane.b32.xlu1 %v5057_v61, %s4628_s12 }
 0xbea   :  { %2042 = vrot.lane.b32.xlu1 %v5057_v61, %s4631_s14 }
 0xbee   :  { %2120 = vrot.lane.b32.xlu1 %v5057_v61, %s4632_s15 }
 0xc4f   :  { %v5077_v13 = vpop.permute.xlu0 %2034 }
 0xc50   :  { %2272 = vrot.lane.b32.xlu1 %v5077_v13, %s4632_s15  ;;  %v5081_v1 = vpop.permute.xlu1 %2032 }
 0xc51   :  { %2196 = vrot.lane.b32.xlu0 %v5081_v1, %s4632_s15 }
 0xc53   :  { %v5085_v2 = vpop.permute.xlu0 %2040 }
 0xc54   :  { %v5087_v3 = vpop.permute.xlu1 %2036 }
 0xc55   :  { %2348 = vrot.lane.b32.xlu0 %v5087_v3, %s4632_s15 }
 0xc57   :  { %v2045_v4 = vpop.permute.xlu0 %2044 }
 0xc58   :  { %4237 = vmatpush3.xpose.msk.msra.mxu0 %vm247_vm3, %v2045_v4  ;;  %v5092_v5 = vpop.permute.xlu1 %2038 }
 0xc59   :  { %2500 = vrot.lane.b32.xlu0 %v5085_v2, %s4632_s15  ;;  %2424 = vrot.lane.b32.xlu1 %v5092_v5, %s4632_s15 }
 0xc5a   :  { %4241 = vmatprep.subr.mxu0 %v4627_v23 }
 0xc5b   :  { %4239 = vmatmul.mubr.msk.f32.vlgmr.msra.gmra.mrb[26].mxu0 %vm247_vm3, %v5059_v63 }
 0xc5c   :  { %v5101_v6 = vpop.permute.xlu1 %2042  ;;  %4243 = vmatprep.mubr.msk.f32.mxu0 %vm4630_vm2, %v4627_v23 }
 0xc5d   :  { %2576 = vrot.lane.b32.xlu1 %v5101_v6, %s4632_s15 }
 0xc60   :  { %v2121_v7 = vpop.permute.xlu1 %2120 }
 0xc61   :  { %4242 = vmatpush3.xpose.msk.msra.mxu0 %vm247_vm3, %v2121_v7 }
 0xc62   :  { %4246 = vmatprep.subr.mxu0 %v4627_v23 }
 0xc64   :  { %4244 = vmatmul.mubr.msk.f32.vlgmr.msra.gmra.mrb[28].mxu0 %vm247_vm3, %v5057_v61 }
 0xc65   :  { %4248 = vmatprep.mubr.msk.f32.mxu0 %vm4630_vm2, %v4627_v23 }
 0xcc2   :  { %v2273_v8 = vpop.permute.xlu1 %2272 }
 0xcc3   :  { %v2197_v18 = vpop.permute.xlu0 %2196 }
 0xcc4   :  { %4247 = vmatpush3.xpose.msk.msra.mxu0 %vm247_vm3, %v2197_v18 }
 0xcc5   :  { %4251 = vmatprep.subr.mxu0 %v4627_v23 }
 0xcc7   :  { %v2349_v9 = vpop.permute.xlu0 %2348  ;;  %4249 = vmatmul.mubr.msk.f32.vlgmr.msra.gmra.mrb[30].mxu0 %vm247_vm3, %v5081_v1 }
 0xcc8   :  { %4252 = vmatpush3.xpose.msk.msra.mxu0 %vm247_vm3, %v2273_v8  ;;  %4253 = vmatprep.mubr.msk.f32.mxu0 %vm4630_vm2, %v4627_v23 }
 0xcc9   :  { %4256 = vmatprep.subr.mxu0 %v4627_v23 }
 0xccb   :  { %v2501_v10 = vpop.permute.xlu0 %2500  ;;  %4254 = vmatmul.mubr.msk.f32.vlgmr.msra.gmra.mrb[32].mxu0 %vm247_vm3, %v5077_v13  ;;  %v2425_v11 = vpop.permute.xlu1 %2424 }
 0xccc   :  { %4257 = vmatpush3.xpose.msk.msra.mxu0 %vm247_vm3, %v2349_v9  ;;  %4267 = vmatpush3.xpose.msk.msra.mxu1 %vm247_vm3, %v2501_v10 }
 0xccd   :  { %4258 = vmatprep.mubr.msk.f32.mxu0 %vm4630_vm2, %v4627_v23  ;;  %4261 = vmatprep.subr.mxu0 %v4627_v23 }
 0xcce   :  { %4276 = vmatprep.subr.mxu1 %v4627_v23 }
 0xccf   :  { %4259 = vmatmul.mubr.msk.f32.vlgmr.msra.gmra.mrb[34].mxu0 %vm247_vm3, %v5087_v3  ;;  %4269 = vmatmul.mubr.msk.f32.vlgmr.msra.gmra.mrb[18].mxu1 %vm247_vm3, %v5085_v2  ;;  %v2577_v14 = vpop.permute.xlu1 %2576 }
 0xcd0   :  { %4262 = vmatpush3.xpose.msk.msra.mxu0 %vm247_vm3, %v2425_v11  ;;  %4263 = vmatprep.mubr.msk.f32.mxu0 %vm4630_vm2, %v4627_v23 }
 0xcd1   :  { %4271 = vmatprep.subr.mxu0 %v4627_v23  ;;  %4278 = vmatprep.mubr.msk.f32.mxu1 %vm4630_vm2, %v4627_v23 }
 0xcd3   :  { %4264 = vmatmul.mubr.msk.f32.vlgmr.msra.gmra.mrb[36].mxu0 %vm247_vm3, %v5092_v5 }
 0xcd4   :  { %4272 = vmatpush3.xpose.msk.msra.mxu0 %vm247_vm3, %v2577_v14  ;;  %4273 = vmatprep.mubr.msk.f32.mxu0 %vm4630_vm2, %v4627_v23 }
 0xcd5   :  { %4281 = vmatprep.subr.mxu0 %v4627_v23 }
 0xcd7   :  { %4274 = vmatmul.mubr.msk.f32.vlgmr.msra.gmra.mrb[38].mxu0 %vm247_vm3, %v5101_v6 }
 0xcd8   :  { %4283 = vmatprep.mubr.msk.f32.mxu0 %vm4630_vm2, %v4627_v23 }
 0xd2e   :  { %v2116_v15 = vpop.f32.mrb[26].mxu0 }
 0xd2f   :  { %v4240_v16 = vpop.f32.mrb[27].mxu0  ;;  %v2652_v17 = vsel %vm247_vm3, %v2116_v15, -inf }
 0xd30   :  { %2653 = vmax.xlane.f32.xlu0 %v2652_v17 }
 0xd37   :  { %v2192_v21 = vpop.f32.mrb[28].mxu0 }
 0xd38   :  { %v4245_v22 = vpop.f32.mrb[29].mxu0  ;;  %v2655_v24 = vsel %vm247_vm3, %v2192_v21, -inf }
 0xd39   :  { %2656 = vmax.xlane.f32.xlu1 %v2655_v24 }
 0xd9a   :  { %v2268_v25 = vpop.f32.mrb[30].mxu0 }
 0xd9b   :  { %v4250_v26 = vpop.f32.mrb[31].mxu0  ;;  %v2658_v27 = vsel %vm247_vm3, %v2268_v25, -inf }
 0xd9c   :  { %2659 = vmax.xlane.f32.xlu0 %v2658_v27 }
 0xd9e   :  { %v2344_v28 = vpop.f32.mrb[32].mxu0 }
 0xd9f   :  { %v4255_v29 = vpop.f32.mrb[33].mxu0  ;;  %v2661_v30 = vsel %vm247_vm3, %v2344_v28, -inf }
 0xda0   :  { %2662 = vmax.xlane.f32.xlu0 %v2661_v30 }
 0xda2   :  { %v2420_v33 = vpop.f32.mrb[34].mxu0  ;;  %v2572_v34 = vpop.f32.mrb[18].mxu1 }
 0xda3   :  { %v4260_v35 = vpop.f32.mrb[35].mxu0  ;;  %v4270_v36 = vpop.f32.mrb[19].mxu1  ;;  %v2664_v37 = vsel %vm247_vm3, %v2420_v33, -inf  ;;  %v2670_v40 = vsel %vm247_vm3, %v2572_v34, -inf }
 0xda4   :  { %2665 = vmax.xlane.f32.xlu1 %v2664_v37 }
 0xda6   :  { %v2496_v38 = vpop.f32.mrb[36].mxu0 }
 0xda7   :  { %v4265_v39 = vpop.f32.mrb[37].mxu0  ;;  %v2667_v41 = vsel %vm247_vm3, %v2496_v38, -inf }
 0xda8   :  { %2671 = vmax.xlane.f32.xlu1 %v2670_v40  ;;  %2668 = vmax.xlane.f32.xlu0 %v2667_v41 }
 0xdaa   :  { %v2648_v42 = vpop.f32.mrb[38].mxu0 }
 0xdab   :  { %v4275_v43 = vpop.f32.mrb[39].mxu0  ;;  %v2673_v44 = vsel %vm247_vm3, %v2648_v42, -inf }
 0xdac   :  { %2674 = vmax.xlane.f32.xlu0 %v2673_v44 }
 0xdb9   :  { %2740 = vrot.lane.b32.xlu1 %v5059_v63, %s4633_s16 }
 0xdbd   :  { %2892 = vrot.lane.b32.xlu1 %v5081_v1, %s4633_s16  ;;  %v2654_v49 = vpop.xlane.xlu0 %2653 }
 0xdbe   :  { %v2676_v52 = vsub.f32 %v2116_v15, %v2654_v49 }
 0xdc0   :  { %v2684_v54 = vmul.f32 1.442695, %v2676_v52 }
 0xdc1   :  { %2968 = vrot.lane.b32.xlu1 %v5077_v13, %s4633_s16 }
 0xdc2   :  { %2816 = vrot.lane.b32.xlu0 %v5057_v61, %s4633_s16 }
 0xdc5   :  { %3120 = vrot.lane.b32.xlu1 %v5092_v5, %s4633_s16 }
 0xdc6   :  { %3044 = vrot.lane.b32.xlu0 %v5087_v3, %s4633_s16  ;;  %v2657_v45 = vpop.xlane.xlu1 %2656 }
 0xdc7   :  { %v2677_v48 = vsub.f32 %v2192_v21, %v2657_v45 }
 0xdc9   :  { %v2686_v53 = vmul.f32 1.442695, %v2677_v48 }
 0xdcb   :  { %4558 = vpow2.f32 %v2686_v53 }
 0xdcc   :  { %4560 = vpow2.f32 %v2684_v54 }
 0xdd5   :  { %v5169_v55 = vpop.eup %4558 }
 0xdd6   :  { %v2703_v56 = vsel %vm247_vm3, %v5169_v55, 0.0  ;;  %v5173_v58 = vpop.eup %4560 }
 0xdd7   :  { %v2700_v20 = vsel %vm247_vm3, %v5173_v58, 0.0 }
 0xde5   :  { %2704 = vadd.xlane.f32.xlu0 %v2703_v56 }
 0xde9   :  { %2701 = vadd.xlane.f32.xlu1 %v2700_v20 }
 0xe29   :  { %v2660_v60 = vpop.xlane.xlu0 %2659 }
 0xe2a   :  { %v2678_v61 = vsub.f32 %v2268_v25, %v2660_v60 }
 0xe2c   :  { %v2688_v62 = vmul.f32 1.442695, %v2678_v61 }
 0xe2d   :  { %v2663_v63 = vpop.xlane.xlu0 %2662 }
 0xe2e   :  { %4562 = vpow2.f32 %v2688_v62  ;;  %v2679_v13 = vsub.f32 %v2344_v28, %v2663_v63 }
 0xe30   :  { %v2690_v1 = vmul.f32 1.442695, %v2679_v13 }
 0xe31   :  { %v2666_v3 = vpop.xlane.xlu1 %2665 }
 0xe32   :  { %4564 = vpow2.f32 %v2690_v1  ;;  %v2680_v4 = vsub.f32 %v2420_v33, %v2666_v3 }
 0xe34   :  { %v2692_v14 = vmul.f32 1.442695, %v2680_v4 }
 0xe35   :  { %v2669_v5 = vpop.xlane.xlu0 %2668  ;;  %v2672_v7 = vpop.xlane.xlu1 %2671 }
 0xe36   :  { %v2681_v18 = vsub.f32 %v2496_v38, %v2669_v5  ;;  %v2682_v8 = vsub.f32 %v2572_v34, %v2672_v7 }
 0xe38   :  { %v4563_v9 = vpop.eup %4562  ;;  %v2694_v10 = vmul.f32 1.442695, %v2681_v18  ;;  %v2696_v11 = vmul.f32 1.442695, %v2682_v8 }
 0xe39   :  { %v2675_v15 = vpop.xlane.xlu0 %2674  ;;  %v2741_v16 = vpop.permute.xlu1 %2740  ;;  %v2706_v17 = vsel %vm247_vm3, %v4563_v9, 0.0 }
 0xe3a   :  { %4566 = vpow2.f32 %v2694_v10  ;;  %v2683_v21 = vsub.f32 %v2648_v42, %v2675_v15  ;;  %2707 = vadd.xlane.f32.xlu1 %v2706_v17  ;;  %4277 = vmatpush3.msra.mxu1 %v2741_v16  ;;  %v3869_v15 = vld [vmem:[%s5380_s2 + $0x80] sm:$0xff] }
 0xe3b   :  { %4568 = vpow2.f32 %v2696_v11  ;;  %4286 = vmatprep.subr.mxu1 %v4627_v23 }
 0xe3c   :  { %v4565_v22 = vpop.eup %4564  ;;  %v2698_v24 = vmul.f32 1.442695, %v2683_v21  ;;  %4570 = vpow2.f32 %v2692_v14  ;;  %v3866_v14 = vld [vmem:[%s5380_s2 + $0x68] sm:$0xff] }
 0xe3d   :  { %v2817_v25 = vpop.permute.xlu0 %2816  ;;  %v2709_v26 = vsel %vm247_vm3, %v4565_v22, 0.0  ;;  %v2893_v37 = vpop.permute.xlu1 %2892  ;;  %v4452_v17 = vpack.c.bf16 %v3869_v15, %v3866_v14  ;;  %v3877_v14 = vld [vmem:[%s5381_s3 + $0x80] sm:$0xff]  ;;  %v3878_v15 = vld [vmem:[%s5381_s3 + $0x88] sm:$0xff] }
 0xe3e   :  { %4572 = vpow2.f32 %v2698_v24  ;;  %4282 = vmatpush3.msra.mxu0 %v2817_v25  ;;  %2710 = vadd.xlane.f32.xlu0 %v2709_v26  ;;  %v3872_v24 = vld [vmem:[%s5380_s2 + $0x98] sm:$0xff]  ;;  %v3875_v25 = vld [vmem:[%s5380_s2 + $0xb0] sm:$0xff] }
 0xe3f   :  { %4291 = vmatprep.subr.mxu0 %v4627_v23  ;;  %v4456_v26 = vpack.c.bf16 %v3875_v25, %v3872_v24  ;;  %v3881_v24 = vld [vmem:[%s5381_s3 + $0xa0] sm:$0xff]  ;;  %v3882_v25 = vld [vmem:[%s5381_s3 + $0xa8] sm:$0xff] }
 0xe41   :  { %v2969_v38 = vpop.permute.xlu1 %2968  ;;  %v3045_v39 = vpop.permute.xlu0 %3044 }
 0xe44   :  { %v4567_v27 = vpop.eup %4566 }
 0xe45   :  { %v5181_v28 = vpop.eup %4568  ;;  %v2715_v29 = vsel %vm247_vm3, %v4567_v27, 0.0  ;;  %v3121_v40 = vpop.permute.xlu1 %3120 }
 0xe46   :  { %2716 = vadd.xlane.f32.xlu0 %v2715_v29  ;;  %v2718_v30 = vsel %vm247_vm3, %v5181_v28, 0.0  ;;  %v4571_v33 = vpop.eup %4570 }
 0xe47   :  { %2719 = vadd.xlane.f32.xlu1 %v2718_v30  ;;  %v2712_v36 = vsel %vm247_vm3, %v4571_v33, 0.0 }
 0xe48   :  { %v4573_v34 = vpop.eup %4572 }
 0xe49   :  { %v2721_v35 = vsel %vm247_vm3, %v4573_v34, 0.0 }
 0xe4a   :  { %2722 = vadd.xlane.f32.xlu0 %v2721_v35 }
 0xe4b   :  { %2713 = vadd.xlane.f32.xlu1 %v2712_v36 }
 0xe5c   :  { %3272 = vrot.lane.b32.xlu1 %v5101_v6, %s4633_s16 }
 0xe60   :  { %3196 = vrot.lane.b32.xlu0 %v5085_v2, %s4633_s16 }
 0xe72   :  { %v2705_v41 = vpop.xlane.xlu0 %2704 }
 0xe73   :  { %4574 = vrcp.f32 %v2705_v41 }
 0xe76   :  { %v2702_v42 = vpop.xlane.xlu1 %2701 }
 0xe77   :  { %4576 = vrcp.f32 %v2702_v42 }
 0xe7d   :  { %v4575_v43 = vpop.eup %4574 }
 0xe7e   :  { %v2733_v44 = vmul.f32 %v4575_v43, %v5169_v55 }
 0xe80   :  { %4284 = vmatmul.mubr.msk.f32.vlgmr.msra.gmra.mrb[40].mxu0 %vm247_vm3, %v2733_v44 }
 0xe81   :  { %v4577_v45 = vpop.eup %4576  ;;  %4292 = vmatpush3.msra.mxu0 %v2969_v38  ;;  %4293 = vmatprep.mubr.msk.f32.mxu0 %vm4630_vm2, %v4627_v23 }
 0xe82   :  { %v2732_v2 = vmul.f32 %v4577_v45, %v5173_v58  ;;  %4301 = vmatprep.subr.mxu0 %v4627_v23 }
 0xe84   :  { %4279 = vmatmul.mubr.msk.f32.vlgmr.msra.gmra.mrb[20].mxu1 %vm247_vm3, %v2732_v2 }
 0xe85   :  { %4287 = vmatpush3.msra.mxu1 %v2893_v37  ;;  %4288 = vmatprep.mubr.msk.f32.mxu1 %vm4630_vm2, %v4627_v23 }
 0xe86   :  { %4296 = vmatprep.subr.mxu1 %v4627_v23 }
 0xec7   :  { %v2708_v6 = vpop.xlane.xlu1 %2707 }
 0xec8   :  { %4578 = vrcp.f32 %v2708_v6 }
 0xecb   :  { %v2711_v48 = vpop.xlane.xlu0 %2710 }
 0xecc   :  { %4580 = vrcp.f32 %v2711_v48 }
 0xed2   :  { %v4579_v49 = vpop.eup %4578 }
 0xed3   :  { %v2734_v52 = vmul.f32 %v4579_v49, %v4563_v9  ;;  %v2717_v53 = vpop.xlane.xlu0 %2716  ;;  %v3381_v49 = vrot.slane %v5053_v32, %v4914_v57 }
 0xed4   :  { %4582 = vrcp.f32 %v2717_v53  ;;  %v2720_v54 = vpop.xlane.xlu1 %2719 }
 0xed5   :  { %4289 = vmatmul.mubr.msk.f32.vlgmr.msra.gmra.mrb[22].mxu1 %vm247_vm3, %v2734_v52 }
 0xed6   :  { %v4581_v55 = vpop.eup %4580  ;;  %4297 = vmatpush3.msra.mxu1 %v3045_v39  ;;  %4298 = vmatprep.mubr.msk.f32.mxu1 %vm4630_vm2, %v4627_v23 }
 0xed7   :  { %v2735_v56 = vmul.f32 %v4581_v55, %v4565_v22  ;;  %v2723_v58 = vpop.xlane.xlu0 %2722  ;;  %4306 = vmatprep.subr.mxu1 %v4627_v23 }
 0xed8   :  { %4584 = vrcp.f32 %v2723_v58  ;;  %v2714_v20 = vpop.xlane.xlu1 %2713 }
 0xed9   :  { %4586 = vrcp.f32 %v2714_v20  ;;  %4294 = vmatmul.mubr.msk.f32.vlgmr.msra.gmra.mrb[42].mxu0 %vm247_vm3, %v2735_v56 }
 0xeda   :  { %4302 = vmatpush3.msra.mxu0 %v3121_v40  ;;  %4303 = vmatprep.mubr.msk.f32.mxu0 %vm4630_vm2, %v4627_v23  ;;  %4588 = vrcp.f32 %v2720_v54 }
 0xedb   :  { %4311 = vmatprep.subr.mxu0 %v4627_v23  ;;  %v3197_v5 = vpop.permute.xlu0 %3196 }
 0xedc   :  { %v3273_v62 = vpop.permute.xlu1 %3272 }
 0xede   :  { %v4583_v60 = vpop.eup %4582 }
 0xedf   :  { %v2737_v61 = vmul.f32 %v4583_v60, %v4567_v27 }
 0xee1   :  { %4304 = vmatmul.mubr.msk.f32.vlgmr.msra.gmra.mrb[44].mxu0 %vm247_vm3, %v2737_v61 }
 0xee2   :  { %v4585_v63 = vpop.eup %4584  ;;  %4312 = vmatpush3.msra.mxu0 %v3273_v62  ;;  %4313 = vmatprep.mubr.msk.f32.mxu0 %vm4630_vm2, %v4627_v23 }
 0xee3   :  { %v4587_v13 = vpop.eup %4586  ;;  %v2739_v1 = vmul.f32 %v4585_v63, %v4573_v34 }
 0xee4   :  { %v2736_v3 = vmul.f32 %v4587_v13, %v4571_v33  ;;  %v4589_v4 = vpop.eup %4588 }
 0xee5   :  { %4314 = vmatmul.mubr.msk.f32.vlgmr.msra.gmra.mrb[46].mxu0 %vm247_vm3, %v2739_v1  ;;  %v2738_v7 = vmul.f32 %v4589_v4, %v5181_v28 }
 0xee6   :  { %4299 = vmatmul.mubr.msk.f32.vlgmr.msra.gmra.mrb[24].mxu1 %vm247_vm3, %v2736_v3 }
 0xee7   :  { %4307 = vmatpush3.msra.mxu1 %v3197_v5  ;;  %4308 = vmatprep.mubr.msk.f32.mxu1 %vm4630_vm2, %v4627_v23 }
 0xee8   :  { %4453 = vmatprep.subr.bf16.mxu1 %v4452_v17 }
 0xeea   :  { %4309 = vmatmul.mubr.msk.f32.vlgmr.msra.gmra.mrb[26].mxu1 %vm247_vm3, %v2738_v7  ;;  %v3867_v7 = vld [vmem:[%s5380_s2 + $0x70] sm:$0xff] }
 0xeeb   :  { %4455 = vmatpush3.bf16.msra.mxu1 %v4452_v17  ;;  %v4468_v17 = vpack.c.bf16 %v3878_v15, %v3877_v14 }
 0xeec   :  { %4457 = vmatprep.subr.bf16.mxu1 %v4456_v26 }
 0xeef   :  { %4459 = vmatpush3.bf16.msra.mxu1 %v4456_v26  ;;  %v4476_v26 = vpack.c.bf16 %v3882_v25, %v3881_v24  ;;  %v26_v25 = vld [vmem:[%s5379_s1 + $0x20] sm:$0xff] }
 0xef0   :  { %4469 = vmatprep.subr.bf16.mxu1 %v4468_v17 }
 0xf53   :  { %v2888_v18 = vpop.f32.mrb[40].mxu0 }
 0xf54   :  { %v4285_v8 = vpop.f32.mrb[41].mxu0 }
 0xf57   :  { %v2812_v9 = vpop.f32.mrb[20].mxu1 }
 0xf58   :  { %v4280_v10 = vpop.f32.mrb[21].mxu1 }
 0xf59   :  { %v3876_v10 = vld [vmem:[%s5380_s2 + $0xb8] sm:$0xff] }
 0xfa8   :  { %v2964_v11 = vpop.f32.mrb[22].mxu1 }
 0xfa9   :  { %3350 = vrot.lane.b32.xlu0 %v2964_v11, %s4634_s25  ;;  %v4290_v16 = vpop.f32.mrb[23].mxu1 }
 0xfaa   :  { %v3879_v16 = vld [vmem:[%s5381_s3 + $0x90] sm:$0xff] }
 0xfac   :  { %v3040_v21 = vpop.f32.mrb[42].mxu0 }
 0xfad   :  { %3352 = vrot.lane.b32.xlu1 %v3040_v21, %s4634_s25  ;;  %v4295_v22 = vpop.f32.mrb[43].mxu0  ;;  %v3880_v21 = vld [vmem:[%s5381_s3 + $0x98] sm:$0xff] }
 0xfae   :  { %v4472_v22 = vpack.c.bf16 %v3880_v21, %v3879_v16 }
 0xfb4   :  { %v3192_v27 = vpop.f32.mrb[44].mxu0 }
 0xfb5   :  { %3360 = vrot.lane.b32.xlu1 %v3192_v27, %s4635_s26  ;;  %v4305_v28 = vpop.f32.mrb[45].mxu0  ;;  %v3883_v27 = vld [vmem:[%s5381_s3 + $0xb0] sm:$0xff] }
 0xfb6   :  { %v3884_v28 = vld [vmem:[%s5381_s3 + $0xb8] sm:$0xff] }
 0xfb8   :  { %v3344_v29 = vpop.f32.mrb[46].mxu0 }
 0xfb9   :  { %v3116_v30 = vpop.f32.mrb[24].mxu1  ;;  %3368 = vrot.lane.b32.xlu1 %v3344_v29, %s4636_s27  ;;  %v4315_v33 = vpop.f32.mrb[47].mxu0  ;;  %v4480_v29 = vpack.c.bf16 %v3884_v28, %v3883_v27  ;;  %v28_v27 = vld [vmem:[%s5379_s1 + $0x30] sm:$0xff]  ;;  %v4637_v28 = vmov 0.0|0.0  }
 0xfba   :  { %3358 = vrot.lane.b32.xlu0 %v3116_v30, %s4635_s26  ;;  %v4300_v34 = vpop.f32.mrb[25].mxu1  ;;  %v3885_v30 = vld [vmem:[%s5381_s3 + $0xc0] sm:$0xff]  ;;  %v3886_v33 = vld [vmem:[%s5381_s3 + $0xc8] sm:$0xff] }
 0xfbb   :  { %v4484_v34 = vpack.c.bf16 %v3886_v33, %v3885_v30  ;;  %v29_v30 = vld [vmem:[%s5379_s1 + $0x38] sm:$0xff] }
 0xfbc   :  { %v4504_v33 = vpack.c.bf16 %v29_v30, %v28_v27 }
 0xfbd   :  { %v3268_v35 = vpop.f32.mrb[26].mxu1 }
 0xfbe   :  { %3366 = vrot.lane.b32.xlu0 %v3268_v35, %s4636_s27  ;;  %v4310_v36 = vpop.f32.mrb[27].mxu1  ;;  %v3887_v35 = vld [vmem:[%s5381_s3 + $0xd0] sm:$0xff] }
 0xfbf   :  { %v3888_v36 = vld [vmem:[%s5381_s3 + $0xd8] sm:$0xff] }
0x101b   :  { %v3351_v38 = vpop.permute.xlu0 %3350 }
0x101c   :  { %v3372_v41 = vsel %vm247_vm3, %v2812_v9, %v3351_v38  ;;  %v3873_v9 = vld [vmem:[%s5380_s2 + $0xa0] sm:$0xff] }
0x101d   :  { %v4464_v11 = vpack.c.bf16 %v3876_v10, %v3873_v9  ;;  %v3889_v38 = vld [vmem:[%s5381_s3 + $0xe0] sm:$0xff] }
0x101f   :  { %v3353_v37 = vpop.permute.xlu1 %3352 }
0x1020   :  { %v3373_v43 = vsel %vm247_vm3, %v2888_v18, %v3353_v37  ;;  %v3870_v18 = vld [vmem:[%s5380_s2 + $0x88] sm:$0xff]  ;;  %v4488_v37 = vpack.c.bf16 %v3888_v36, %v3887_v35 }
0x1021   :  { %v4460_v8 = vpack.c.bf16 %v3870_v18, %v3867_v7 }
0x1023   :  { %4461 = vmatprep.subr.bf16.mxu0 %v4460_v8 }
0x1024   :  { %4463 = vmatpush3.bf16.msra.mxu0 %v4460_v8 }
0x1025   :  { %4465 = vmatprep.subr.bf16.mxu0 %v4464_v11 }
0x1027   :  { %v3361_v39 = vpop.permute.xlu1 %3360 }
0x1028   :  { %v3375_v2 = vsel %vm34_vm0, %v3373_v43, %v3361_v39  ;;  %4467 = vmatpush3.bf16.msra.mxu0 %v4464_v11  ;;  %v3890_v39 = vld [vmem:[%s5381_s3 + $0xe8] sm:$0xff] }
0x1029   :  { %4500 = vmatprep.subr.bf16.mxu0 %v4637_v28 }
0x102b   :  { %v3369_v42 = vpop.permute.xlu1 %3368 }
0x102c   :  { %v3359_v40 = vpop.permute.xlu0 %3358  ;;  %v3377_v48 = vsel %vm1578_vm4, %v3375_v2, %v3369_v42 }
0x102d   :  { %v3374_v44 = vsel %vm34_vm0, %v3372_v41, %v3359_v40  ;;  %v4492_v40 = vpack.c.bf16 %v3890_v39, %v3889_v38 }
0x1030   :  { %v3367_v45 = vpop.permute.xlu0 %3366 }
0x1031   :  { %v3376_v6 = vsel %vm1578_vm4, %v3374_v44, %v3367_v45 }
0x1032   :  { %4324 = vmatprep.mubr.msk.f32.mxu1 %vm149_vm1, %v3376_v6  ;;  %v3494_v6 = vrot.slane %v5053_v32, %v1697_v50  ;;  %v3891_v50 = vld [vmem:[%s5381_s3 + $0xf0] sm:$0xff] }
0x1033   :  { %4325 = vmatmul.mubr.msk.f32.vlgmr.msra.gmra.mrb[28].mxu1 %vm149_vm1, %v3377_v48 }
0x1034   :  { %4471 = vmatpush3.bf16.msra.mxu1 %v4468_v17 }
0x1035   :  { %4473 = vmatprep.subr.bf16.mxu1 %v4472_v22 }
0x1038   :  { %4475 = vmatpush3.bf16.msra.mxu1 %v4472_v22 }
0x1039   :  { %4477 = vmatprep.subr.bf16.mxu1 %v4476_v26 }
0x103c   :  { %4479 = vmatpush3.bf16.msra.mxu1 %v4476_v26  ;;  %v27_v26 = vld [vmem:[%s5379_s1 + $0x28] sm:$0xff] }
0x103d   :  { %4481 = vmatprep.subr.bf16.mxu1 %v4480_v29 }
0x1040   :  { %4483 = vmatpush3.bf16.msra.mxu1 %v4480_v29  ;;  %v4501_v29 = vpack.c.bf16 %v27_v26, %v26_v25 }
0x1041   :  { %4485 = vmatprep.subr.bf16.mxu1 %v4484_v34 }
0x1044   :  { %4487 = vmatpush3.bf16.msra.mxu1 %v4484_v34 }
0x1045   :  { %4489 = vmatprep.subr.bf16.mxu1 %v4488_v37 }
0x1048   :  { %4491 = vmatpush3.bf16.msra.mxu1 %v4488_v37 }
0x1049   :  { %4493 = vmatprep.subr.bf16.mxu1 %v4492_v40 }
0x104c   :  { %4495 = vmatpush3.bf16.msra.mxu1 %v4492_v40  ;;  %v3700_v40 = vrot.slane %v5053_v32, %v1903_v46 }
0x1106   :  { %v4326_v52 = vpop.f32.mrb[28].mxu1 }
0x1107   :  { %v3460_v53 = vadd.f32 %v4326_v52, %v3381_v49  ;;  %v3454_v54 = vpop.f32.mrb[29].mxu1  ;;  %v3500_v52 = vrot.slane %v5053_v32, %v1703_v51  ;;  %v3892_v51 = vld [vmem:[%s5381_s3 + $0xf8] sm:$0xff] }
0x1108   :  { %v3455_v55 = vadd.f32 %v3454_v54, %v3381_v49 }
0x1109   :  { %v3464_v56 = vadd.f32 %v3460_v53, %v5042_v31 }
0x110a   :  { %v3463_v58 = vadd.f32 %v3455_v55, %v5040_v59 }
0x110b   :  { %v3468_v20 = vsel %vm149_vm1, %v3464_v56, 0.0 }
0x110c   :  { %3469 = vadd.xlane.f32.xlu1 %v3468_v20  ;;  %v3465_v60 = vsel %vm149_vm1, %v3463_v58, 0.0 }
0x110d   :  { %3466 = vadd.xlane.f32.xlu0 %v3465_v60  ;;  %v4496_v60 = vpack.c.bf16 %v3892_v51, %v3891_v50 }
0x110f   :  { %4497 = vmatprep.subr.bf16.mxu1 %v4496_v60 }
0x1110   :  { %4499 = vmatpush3.bf16.msra.mxu1 %v4496_v60 }
0x1199   :  { %v3470_v61 = vpop.xlane.xlu1 %3469 }
0x119a   :  { %v3472_v62 = vmul.f32 0.03125, %v3470_v61  ;;  %v3467_v63 = vpop.xlane.xlu0 %3466  ;;  %v3506_v61 = vrot.slane %v5053_v32, %v1709_v0 }
0x119b   :  { %v3471_v13 = vmul.f32 0.03125, %v3467_v63 }
0x119c   :  { %v5251_v1 = vsub.f32 %v3464_v56, %v3472_v62 }
0x119d   :  { %v3473_v3 = vsub.f32 %v3463_v58, %v3471_v13 }
0x119e   :  { %v3476_v31 = vmul.f32 %v5251_v1, %v5251_v1 }
0x119f   :  { %v3475_v4 = vmul.f32 %v3473_v3, %v3473_v3 }
0x11a0   :  { %v3480_v59 = vsel %vm149_vm1, %v3476_v31, 0.0 }
0x11a1   :  { %v3477_v5 = vsel %vm149_vm1, %v3475_v4, 0.0  ;;  %v3593_v4 = vrot.slane %v5053_v32, %v1796_v19 }
0x11a2   :  { %3478 = vadd.xlane.f32.xlu0 %v3477_v5 }
0x11a6   :  { %3481 = vadd.xlane.f32.xlu0 %v3480_v59 }
0x122f   :  { %v3479_v41 = vpop.xlane.xlu0 %3478 }
0x1230   :  { %v3483_v42 = vmul.f32 0.03125, %v3479_v41 }
0x1232   :  { %v3485_v43 = vadd.f32 1e-05, %v3483_v42 }
0x1233   :  { %v3482_v44 = vpop.xlane.xlu0 %3481 }
0x1234   :  { %4590 = vrsqrt.f32 %v3485_v43  ;;  %v3484_v45 = vmul.f32 0.03125, %v3482_v44  ;;  %v3706_v43 = vrot.slane %v5053_v32, %v1909_v47 }
0x1236   :  { %v3486_v2 = vadd.f32 1e-05, %v3484_v45 }
0x1238   :  { %4592 = vrsqrt.f32 %v3486_v2 }
0x123e   :  { %v4591_v48 = vpop.eup %4590 }
0x123f   :  { %v3489_v49 = vmul.f32 %v4591_v48, %v3473_v3 }
0x1241   :  { %v3495_v53 = vmul.f32 %v3494_v6, %v3489_v49 }
0x1242   :  { %v4593_v54 = vpop.eup %4592 }
0x1243   :  { %v3490_v55 = vmul.f32 %v4593_v54, %v5251_v1  ;;  %v3501_v56 = vadd.f32 %v3500_v52, %v3495_v53 }
0x1245   :  { %v3496_v58 = vmul.f32 %v3494_v6, %v3490_v55  ;;  %4335 = vmatprep.mubr.msk.f32.mxu0 %vm149_vm1, %v3501_v56 }
0x1247   :  { %v3502_v20 = vadd.f32 %v3500_v52, %v3496_v58 }
0x1249   :  { %4336 = vmatmul.mubr.msk.f32.vlgmr.msra.gmra.mrb[48].mxu0 %vm149_vm1, %v3502_v20 }
0x124a   :  { %4381 = vmatprep.mubr.msk.f32.mxu0 %vm4630_vm2, %v4627_v23  ;;  %4502 = vmatpush3.bf16.msra.mxu0 %v4501_v29 }
0x124b   :  { %4503 = vmatprep.subr.bf16.mxu0 %v4637_v28 }
0x124e   :  { %4505 = vmatpush3.bf16.msra.mxu0 %v4504_v33 }
0x131c   :  { %v4337_v62 = vpop.f32.mrb[48].mxu0 }
0x131d   :  { %v3585_v63 = vadd.f32 %v4337_v62, %v3506_v61  ;;  %v3579_v13 = vpop.f32.mrb[49].mxu0 }
0x131e   :  { %v3580_v1 = vadd.f32 %v3579_v13, %v3506_v61  ;;  %v4602_v13 = vld [vmem:[%s5379_s1 + $0x10] sm:$0xff]  ;;  %s4638_s1 = smov [#allocation2]  }
0x131f   :  { %v3589_v3 = vmax.f32 %v3585_v63, 0.0  ;;  %s3825_s12 = sshll.u32 %s4638_s1, 4  ;;  %s3826_s12 = int_to_ptr.vmem [resolvable:$true] %s3825_s12 }
0x1320   :  { %v3588_v23 = vmax.f32 %v3580_v1, 0.0  ;;  %v3729_v1 = vrot.slane %v4602_v13, %v4914_v57  ;;  %s4603_s13 = scalar_lea.vmem %s3826_s12, 32  ;;  %p4608_p1 = scmp.lt.s32.totalorder %s3826_s12, %s3826_s12 }
0x1321   :  { %p4604_p0 = scmp.ne.s32.totalorder %s3826_s12, %s4603_s13  ;;  %p4609_p2 = scmp.lt.s32.totalorder %s4603_s13, %s4603_s13 }
0x1322   :  { %4370 = vmatprep.mubr.f32.mxu1 %v3588_v23 }
0x1323   :  { %4371 = vmatmul.mubr.f32.vlgmr.msra.gmra.mrb[30].mxu1 %v3589_v3  ;;  %p4610_p3 = por %p4609_p2, %p4608_p1 }
0x1325   :  { %p4611_p4 = pnand %p4610_p3, %p4604_p0 }
0x13f6   :  { %v4372_v5 = vpop.f32.mrb[30].mxu1 }
0x13f7   :  { %v3666_v31 = vadd.f32 %v4372_v5, %v3593_v4  ;;  %v3660_v59 = vpop.f32.mrb[31].mxu1 }
0x13f8   :  { %v3661_v7 = vadd.f32 %v3660_v59, %v3593_v4 }
0x13f9   :  { %v3670_v18 = vadd.f32 %v3666_v31, %v3502_v20 }
0x13fa   :  { %v3669_v8 = vadd.f32 %v3661_v7, %v3501_v56 }
0x13fb   :  { %v3674_v0 = vsel %vm149_vm1, %v3670_v18, 0.0 }
0x13fc   :  { %3675 = vadd.xlane.f32.xlu0 %v3674_v0  ;;  %v3671_v9 = vsel %vm149_vm1, %v3669_v8, 0.0 }
0x13fd   :  { %3672 = vadd.xlane.f32.xlu1 %v3671_v9 }
0x1489   :  { %v3676_v10 = vpop.xlane.xlu0 %3675 }
0x148a   :  { %v3678_v11 = vmul.f32 0.03125, %v3676_v10  ;;  %v3673_v14 = vpop.xlane.xlu1 %3672 }
0x148b   :  { %v3677_v15 = vmul.f32 0.03125, %v3673_v14 }
0x148c   :  { %v3680_v16 = vsub.f32 %v3670_v18, %v3678_v11 }
0x148d   :  { %v3679_v17 = vsub.f32 %v3669_v8, %v3677_v15 }
0x148e   :  { %v3682_v21 = vmul.f32 %v3680_v16, %v3680_v16 }
0x148f   :  { %v3681_v19 = vmul.f32 %v3679_v17, %v3679_v17 }
0x1490   :  { %v3686_v22 = vsel %vm149_vm1, %v3682_v21, 0.0 }
0x1491   :  { %3687 = vadd.xlane.f32.xlu0 %v3686_v22  ;;  %v3683_v24 = vsel %vm149_vm1, %v3681_v19, 0.0 }
0x1492   :  { %3684 = vadd.xlane.f32.xlu1 %v3683_v24 }
0x151e   :  { %v3688_v34 = vpop.xlane.xlu0 %3687 }
0x151f   :  { %v3690_v35 = vmul.f32 0.03125, %v3688_v34  ;;  %v3685_v36 = vpop.xlane.xlu1 %3684 }
0x1520   :  { %v3689_v37 = vmul.f32 0.03125, %v3685_v36 }
0x1521   :  { %v3692_v38 = vadd.f32 1e-05, %v3690_v35 }
0x1522   :  { %v3691_v39 = vadd.f32 1e-05, %v3689_v37 }
0x1523   :  { %4594 = vrsqrt.f32 %v3692_v38 }
0x1524   :  { %4596 = vrsqrt.f32 %v3691_v39 }
0x152d   :  { %v4595_v41 = vpop.eup %4594 }
0x152e   :  { %v4597_v42 = vpop.eup %4596  ;;  %v3696_v44 = vmul.f32 %v4595_v41, %v3680_v16 }
0x152f   :  { %v3695_v45 = vmul.f32 %v4597_v42, %v3679_v17 }
0x1530   :  { %v3702_v2 = vmul.f32 %v3700_v40, %v3696_v44 }
0x1531   :  { %v3701_v6 = vmul.f32 %v3700_v40, %v3695_v45 }
0x1532   :  { %v3708_v48 = vadd.f32 %v3706_v43, %v3702_v2 }
0x1533   :  { %v3707_v49 = vadd.f32 %v3706_v43, %v3701_v6 }
0x1534   :  { %v3716_v52 = vsel %vm149_vm1, %v3708_v48, 0.0 }
0x1535   :  { %v3709_v53 = vsel %vm149_vm1, %v3707_v49, 0.0  ;;  %v3717_v54 = vrot.slane %v3716_v52, 4 }
0x1536   :  { %v3710_v55 = vrot.slane %v3709_v53, 4 }
0x1537   :  { %v3718_v56 = vadd.f32 %v3717_v54, %v3716_v52 }
0x1538   :  { %v3711_v46 = vadd.f32 %v3710_v55, %v3709_v53 }
0x1539   :  { %v3719_v58 = vrot.slane %v3718_v56, 2 }
0x153a   :  { %v3712_v20 = vrot.slane %v3711_v46, 2 }
0x153b   :  { %v3720_v50 = vadd.f32 %v3719_v58, %v3718_v56 }
0x153c   :  { %v3713_v12 = vadd.f32 %v3712_v20, %v3711_v46 }
0x153d   :  { %v3721_v51 = vrot.slane %v3720_v50, 1 }
0x153e   :  { %v3714_v47 = vrot.slane %v3713_v12, 1 }
0x153f   :  { %v3722_v32 = vadd.f32 %v3721_v51, %v3720_v50 }
0x1540   :  { %v3715_v60 = vadd.f32 %v3714_v47, %v3713_v12 }
0x1541   :  { %v3725_v61 = vmul.f32 0.125, %v3722_v32 }
0x1542   :  { %v3724_v62 = vmul.f32 0.125, %v3715_v60 }
0x1544   :  { %v3733_v63 = vsel %vm3732_vm5, %v3725_v61, %v3724_v62 }
0x1545   :  { %4382 = vmatmul.mubr.msk.f32.vlgmr.msra.gmra.mrb[50].mxu0 %vm149_vm1, %v3733_v63 }
0x1618   :  { %v3802_v23 = vpop.f32.mrb[50].mxu0 }
0x1619   :  { %v3803_v3 = vadd.f32 %v3802_v23, %v3729_v1  ;;  %v4383_v4 = vpop.f32.mrb[51].mxu0 }
0x161b   :  { %v3807_v5 = vsel %vm3806_vm6, %v3803_v3, -inf }
0x161c   :  { %3808 = vmax.xlane.f32.xlu1 %v3807_v5 }
0x16a9   :  { %v3809_v31 = vpop.xlane.xlu1 %3808 }
0x16aa   :  { %v3810_v59 = vsub.f32 %v3803_v3, %v3809_v31 }
0x16ac   :  { %v3811_v7 = vmul.f32 1.442695, %v3810_v59 }
0x16ae   :  { %4598 = vpow2.f32 %v3811_v7 }
0x16b8   :  { %v4599_v18 = vpop.eup %4598 }
0x16b9   :  { %v3813_v8 = vsel %vm3806_vm6, %v4599_v18, 0.0 }
0x16ba   :  { %3814 = vadd.xlane.f32.xlu0 %v3813_v8 }
0x1747   :  { %v3815_v0 = vpop.xlane.xlu0 %3814 }
0x1748   :  { %4600 = vrcp.f32 %v3815_v0 }
0x1752   :  { %v4601_v57 = vpop.eup %4600 }
0x1753   :  { %v3817_v9 = vmul.f32 %v4601_v57, %v4599_v18 }
0x1755   :  { %3818 = vst.msk [vmem:[#allocation2] sm:$0x3] %vm3806_vm6, %v3817_v9 }
0x1756   :  { %4614 = shalt.err (!%p4611_p4)
}
0x1757   :  { %s4615_s16 = scalar_lea.hbm %s5383_s5, 32 }
0x1758   :  { %p4616_p5 = scmp.ne.s32.totalorder %s5383_s5, %s4615_s16  ;;  %p4619_p6 = scmp.lt.u32.totalorder %s4615_s16, %s5383_s5 }
0x175a   :  { %p4621_p7 = pnand %p4619_p6, %p4616_p5 }
0x175c   :  { %4624 = shalt.err (!%p4621_p7)
}
0x175d   :  { %3828 = dma.vmem_to_hbm [thread:$0]  %s3826_s12, 32, %s5383_s5, [#allocation3]  }
0x175e   :  { %4625 = dma.done.wait [#allocation3], 32  }
0x175f   :  { %4626 = vsyncadd [#allocation3], 4294967264 }
0x1760   :  { %3832 = vsyncpa [#allocation3], 1 }

</bundles_post_ra>
